<compile_context>
chip_gen: v7x
topology: tpu7x:2x2x1
jax: 0.10.0
libtpu: 0.0.40
codegen_flags: <defaults>
</compile_context>

<pallas_src>
import functools

import jax
import jax.numpy as jnp
from jax.experimental import pallas as pl
from jax.experimental.pallas import tpu as pltpu


# ----------------------------------------------------------------------------
# Pallas kernel: fused Conv3d(3x3x3, pad=1, no bias) + BatchNorm(eval) + ReLU
# ----------------------------------------------------------------------------
def _make_cbr_kernel(tap_offsets, mout):
    def kernel(w_ref, x_ref, b_ref, o_ref):
        # w_ref: (27, Cout, Cin) bf16  conv weight, BN scale folded, resident
        # x_ref: (Cin, Lf)       bf16  flat zero-padded pooled input (1 batch)
        # b_ref: (Cout, 1)       f32   fused BN bias, resident
        # o_ref: (Cout, Mout)    bf16  conv+BN+ReLU output in padded flat coords
        cout = o_ref.shape[0]
        acc = jnp.zeros((cout, mout), jnp.float32)
        for t, s in enumerate(tap_offsets):          # 27 static taps, unrolled
            x_tap = x_ref[:, pl.ds(s, mout)]         # (Cin, Mout) shifted slice
            acc = acc + jnp.dot(w_ref[t], x_tap,
                                preferred_element_type=jnp.float32)
        y = jnp.maximum(acc + b_ref[...], 0.0)       # f32 epilogue (v5e-friendly)
        o_ref[...] = y.astype(o_ref.dtype)
    return kernel


def _round_up(x, m):
    return (x + m - 1) // m * m


def conv3_bn_relu_pallas(x_pooled, w, bias):
    """x_pooled: (N, Cin, D, H, W) f32; w: (27, Cout, Cin) bf16 (BN folded);
    bias: (Cout, 1) f32.  Returns relu(conv3x3x3(x)+bias): (N, Cout, D, H, W) bf16."""
    n, cin, d, h, w_sp = x_pooled.shape
    cout = w.shape[1]
    dp, hp, wp = d + 2, h + 2, w_sp + 2
    mp = dp * hp * wp                      # padded flat spatial size
    sh = hp * wp + wp + 1                  # max |tap shift| (center-tap offset)
    mout = _round_up(mp, 128)              # lane-dense output width
    lf = _round_up(mout + 2 * sh, 128)     # flat input width incl. shift halo

    # Zero-pad spatially by 1 (the conv padding), flatten, add the flat halo so
    # every shifted tap slice stays in-bounds.
    xp = jnp.pad(x_pooled, ((0, 0), (0, 0), (1, 1), (1, 1), (1, 1)))
    xf = jnp.pad(xp.reshape(n, cin, mp), ((0, 0), (0, 0), (sh, lf - sh - mp)))
    xf = xf.astype(jnp.bfloat16)

    # Static flat shift of tap (kd, kh, kw): column m of the slice starting at
    # this offset is padded-input position m + (kd-1)*Hp*Wp + (kh-1)*Wp + (kw-1).
    tap_offsets = tuple(kd * hp * wp + kh * wp + kw
                        for kd in range(3) for kh in range(3) for kw in range(3))

    # VMEM budget: double-buffered blocks + f32 accumulator + headroom, capped
    # below v7x's 64 MiB physical VMEM.
    block_bytes = w.size * 2 + cin * lf * 2 + cout * 4 + cout * mout * 2
    need = 4 * block_bytes + 2 * cout * mout * 4
    assert need < (48 << 20), "blocks too large for VMEM; needs K/Cout tiling"
    # TODO(synk): for very large Cin/Cout (e.g. 512) add Cout/K grid axes with an
    # f32 VMEM accumulator + pl.when init/finalize so blocks fit v7x's 64 MiB.
    vmem_limit = int(min(max(need + (4 << 20), 16 << 20), 48 << 20))

    y = pl.pallas_call(
        _make_cbr_kernel(tap_offsets, mout),
        out_shape=jax.ShapeDtypeStruct((n, cout, mout), jnp.bfloat16),
        grid=(n,),
        in_specs=[
            pl.BlockSpec((27, cout, cin), lambda i: (0, 0, 0)),   # resident weights
            pl.BlockSpec((None, cin, lf), lambda i: (i, 0, 0)),   # per-batch row (squeezed)
            pl.BlockSpec((cout, 1), lambda i: (0, 0)),            # resident bias
        ],
        out_specs=pl.BlockSpec((None, cout, mout), lambda i: (i, 0, 0)),
        compiler_params=pltpu.CompilerParams(
            dimension_semantics=("parallel",),
            vmem_limit_bytes=vmem_limit),
    )(w, xf, bias)

    # Drop the garbage tail / boundary columns and go back to (N, Cout, D, H, W).
    y = y[:, :, :mp].reshape(n, cout, dp, hp, wp)
    return y[:, :, 1:1 + d, 1:1 + h, 1:1 + w_sp]


# ----------------------------------------------------------------------------
# Plain-JAX glue: adaptive pool + trilinear upsample (small dense einsums)
# ----------------------------------------------------------------------------
def adaptive_avg_pool3d(x, out_size):
    # x: (N, C, D, H, W). Exact match to F.adaptive_avg_pool3d when every input
    # dim is an integer multiple of the corresponding output dim.
    # TODO(synk): general (non-divisible) adaptive pooling windows not implemented.
    n, c, d, h, w = x.shape
    od, oh, ow = out_size
    assert d % od == 0 and h % oh == 0 and w % ow == 0
    x = x.reshape(n, c, od, d // od, oh, h // oh, ow, w // ow)
    return x.mean(axis=(3, 5, 7))


def _interp_matrix(out_size, in_size):
    # Row-stochastic (out, in) matrix matching F.interpolate(mode='trilinear',
    # align_corners=False) along one axis.
    i = jnp.arange(out_size, dtype=jnp.float32)
    src = jnp.maximum((i + 0.5) * (in_size / out_size) - 0.5, 0.0)
    lo = jnp.minimum(jnp.floor(src).astype(jnp.int32), in_size - 1)
    hi = jnp.minimum(lo + 1, in_size - 1)
    w_hi = src - lo.astype(jnp.float32)
    return (jax.nn.one_hot(lo, in_size, dtype=jnp.float32) * (1.0 - w_hi)[:, None]
            + jax.nn.one_hot(hi, in_size, dtype=jnp.float32) * w_hi[:, None])


def trilinear_upsample(x, size):
    # x: (N, C, Dd, Hd, Wd) (bf16 or f32) -> (N, C, *size) f32; three small
    # dense matmuls (bf16 input stream, f32 math via dtype promotion).
    ad = _interp_matrix(size[0], x.shape[2])
    ah = _interp_matrix(size[1], x.shape[3])
    aw = _interp_matrix(size[2], x.shape[4])
    x = jnp.einsum('ij,ncjhw->ncihw', ad, x)
    x = jnp.einsum('ij,ncdjw->ncdiw', ah, x)
    x = jnp.einsum('ij,ncdhj->ncdhi', aw, x)
    return x


# ----------------------------------------------------------------------------
# Module: parameters + forward
# ----------------------------------------------------------------------------
def init_params(key, n_in, n_out):
    # Conv3d weight, PyTorch layout (Cout, Cin, kd, kh, kw), deterministic init.
    w = jax.random.normal(key, (n_out, n_in, 3, 3, 3), jnp.float32) * 0.1

    # BatchNorm3d, eval mode (running_mean=0, running_var=1, eps=0.001), folded
    # into a per-channel scale (into the weights) and a per-channel bias.
    # TODO(synk): training-mode BN (batch statistics, momentum=0.95) not implemented.
    gamma = 1.0 + 0.01 * jnp.arange(n_out, dtype=jnp.float32)
    beta = 0.01 * jnp.arange(n_out, dtype=jnp.float32)
    running_mean = jnp.zeros((n_out,), jnp.float32)
    running_var = jnp.ones((n_out,), jnp.float32)
    eps = 0.001
    scale = gamma / jnp.sqrt(running_var + eps)
    bias = beta - running_mean * scale

    # (Cout, Cin, 3,3,3) -> (27, Cout, Cin), tap order (kd, kh, kw) matching the
    # kernel's tap_offsets loop; BN scale folded; bf16 MXU operand.
    wk = jnp.transpose(w, (2, 3, 4, 0, 1)).reshape(27, n_out, n_in)
    wk = wk * scale[None, :, None]
    return {"w": wk.astype(jnp.bfloat16),
            "bias": bias.reshape(n_out, 1).astype(jnp.float32)}


def psp_dec(x, params, scale):
    """PSPDec.forward. x: (N, Cin, D, H, W) float32 (PyTorch NCDHW layout)."""
    assert x.ndim == 5
    n, _, d, h, w = x.shape
    od, oh, ow = int(d * scale), int(h * scale), int(w * scale)
    x_down = adaptive_avg_pool3d(x, (od, oh, ow))                   # (N, Cin, od, oh, ow)
    y = conv3_bn_relu_pallas(x_down, params["w"], params["bias"])   # (N, Cout, od, oh, ow) bf16
    return trilinear_upsample(y, (d, h, w))                         # (N, Cout, D, H, W) f32


if __name__ == "__main__":
    key = jax.random.PRNGKey(0)
    kx, kp = jax.random.split(key)

    N, C_in, C_out = 2, 4, 8
    D, H, W = 8, 16, 16
    down_scale = 0.5

    x = jax.random.normal(kx, (N, C_in, D, H, W), jnp.float32)
    params = init_params(kp, C_in, C_out)

    fwd = jax.jit(functools.partial(psp_dec, scale=down_scale))
    out = jax.block_until_ready(fwd(x, params))

    assert out.shape == (N, C_out, D, H, W), out.shape
    assert jnp.all(jnp.isfinite(out))

    # Pure-JAX reference (f32 conv via lax, same folded BN weights); loose
    # tolerance covers the bf16 MXU operands / bf16 kernel output.
    od, oh, ow = int(D * down_scale), int(H * down_scale), int(W * down_scale)
    x_down = adaptive_avg_pool3d(x, (od, oh, ow))
    w_ref = jnp.transpose(
        params["w"].astype(jnp.float32).reshape(3, 3, 3, C_out, C_in),
        (3, 4, 0, 1, 2))
    conv = jax.lax.conv_general_dilated(
        x_down, w_ref, window_strides=(1, 1, 1),
        padding=((1, 1), (1, 1), (1, 1)),
        dimension_numbers=("NCDHW", "OIDHW", "NCDHW"),
        precision=jax.lax.Precision.HIGHEST)
    y_ref = jnp.maximum(conv + params["bias"].reshape(1, C_out, 1, 1, 1), 0.0)
    ref = trilinear_upsample(y_ref, (D, H, W))
    err = float(jnp.max(jnp.abs(out - ref)))
    assert err < 3e-2, f"max abs err vs reference: {err}"

    print("KERNEL_OK")
</pallas_src>

<mosaic_0001>
module attributes {stable_mosaic.version = 11 : i64} {
  func.func @kernel(%arg0: i32, %arg1: memref<27x8x4xbf16, #tpu.memory_space<vmem>>, %arg2: memref<1x4x896xbf16, #tpu.memory_space<vmem>>, %arg3: memref<8x1xf32, #tpu.memory_space<vmem>>, %arg4: memref<1x8x640xbf16, #tpu.memory_space<vmem>>) attributes {dimension_semantics = [#tpu.dimension_semantics<parallel>], iteration_bounds = array<i64: 2>, scalar_prefetch = 0 : i64, scratch_operands = 0 : i64, tpu.core_type = #tpu.core_type<tc>, window_params = [{pipeline_mode = #tpu.pipeline_mode<synchronous>, transform_indices = @transform_0, window_bounds = array<i64: 27, 8, 4>}, {transform_indices = @transform_1, window_bounds = array<i64: 1, 4, 896>}, {pipeline_mode = #tpu.pipeline_mode<synchronous>, transform_indices = @transform_2, window_bounds = array<i64: 8, 1>}, {transform_indices = @transform_3, window_bounds = array<i64: 1, 8, 640>}]} {
    %cst = arith.constant 0.000000e+00 : f32
    %0 = vector.broadcast %cst : f32 to vector<8x640xf32>
    %c0 = arith.constant 0 : index
    %c0_0 = arith.constant 0 : index
    %c0_1 = arith.constant 0 : index
    %1 = vector.load %arg2[%c0, %c0_0, %c0_1] : memref<1x4x896xbf16, #tpu.memory_space<vmem>>, vector<1x4x640xbf16>
    %2 = vector.shape_cast %1 : vector<1x4x640xbf16> to vector<4x640xbf16>
    %c0_2 = arith.constant 0 : index
    %c0_3 = arith.constant 0 : index
    %c0_4 = arith.constant 0 : index
    %3 = vector.load %arg1[%c0_2, %c0_3, %c0_4] : memref<27x8x4xbf16, #tpu.memory_space<vmem>>, vector<1x8x4xbf16>
    %4 = vector.shape_cast %3 : vector<1x8x4xbf16> to vector<8x4xbf16>
    %cst_5 = arith.constant dense<0.000000e+00> : vector<8x640xf32>
    %5 = tpu.matmul %4, %2, %cst_5 {dimension_numbers = #tpu.dot_dimension_numbers<[1], [0], [0], [1], [0, 0, 1, 1], [], []>} : vector<8x4xbf16>, vector<4x640xbf16>, vector<8x640xf32> -> vector<8x640xf32>
    %6 = arith.addf %0, %5 : vector<8x640xf32>
    %c0_6 = arith.constant 0 : index
    %c0_7 = arith.constant 0 : index
    %c1 = arith.constant 1 : index
    %7 = vector.load %arg2[%c0_6, %c0_7, %c1] : memref<1x4x896xbf16, #tpu.memory_space<vmem>>, vector<1x4x640xbf16>
    %8 = vector.shape_cast %7 : vector<1x4x640xbf16> to vector<4x640xbf16>
    %c1_8 = arith.constant 1 : index
    %c0_9 = arith.constant 0 : index
    %c0_10 = arith.constant 0 : index
    %9 = vector.load %arg1[%c1_8, %c0_9, %c0_10] : memref<27x8x4xbf16, #tpu.memory_space<vmem>>, vector<1x8x4xbf16>
    %10 = vector.shape_cast %9 : vector<1x8x4xbf16> to vector<8x4xbf16>
    %cst_11 = arith.constant dense<0.000000e+00> : vector<8x640xf32>
    %11 = tpu.matmul %10, %8, %cst_11 {dimension_numbers = #tpu.dot_dimension_numbers<[1], [0], [0], [1], [0, 0, 1, 1], [], []>} : vector<8x4xbf16>, vector<4x640xbf16>, vector<8x640xf32> -> vector<8x640xf32>
    %12 = arith.addf %6, %11 : vector<8x640xf32>
    %c0_12 = arith.constant 0 : index
    %c0_13 = arith.constant 0 : index
    %c2 = arith.constant 2 : index
    %13 = vector.load %arg2[%c0_12, %c0_13, %c2] : memref<1x4x896xbf16, #tpu.memory_space<vmem>>, vector<1x4x640xbf16>
    %14 = vector.shape_cast %13 : vector<1x4x640xbf16> to vector<4x640xbf16>
    %c2_14 = arith.constant 2 : index
    %c0_15 = arith.constant 0 : index
    %c0_16 = arith.constant 0 : index
    %15 = vector.load %arg1[%c2_14, %c0_15, %c0_16] : memref<27x8x4xbf16, #tpu.memory_space<vmem>>, vector<1x8x4xbf16>
    %16 = vector.shape_cast %15 : vector<1x8x4xbf16> to vector<8x4xbf16>
    %cst_17 = arith.constant dense<0.000000e+00> : vector<8x640xf32>
    %17 = tpu.matmul %16, %14, %cst_17 {dimension_numbers = #tpu.dot_dimension_numbers<[1], [0], [0], [1], [0, 0, 1, 1], [], []>} : vector<8x4xbf16>, vector<4x640xbf16>, vector<8x640xf32> -> vector<8x640xf32>
    %18 = arith.addf %12, %17 : vector<8x640xf32>
    %c0_18 = arith.constant 0 : index
    %c0_19 = arith.constant 0 : index
    %c10 = arith.constant 10 : index
    %19 = vector.load %arg2[%c0_18, %c0_19, %c10] : memref<1x4x896xbf16, #tpu.memory_space<vmem>>, vector<1x4x640xbf16>
    %20 = vector.shape_cast %19 : vector<1x4x640xbf16> to vector<4x640xbf16>
    %c3 = arith.constant 3 : index
    %c0_20 = arith.constant 0 : index
    %c0_21 = arith.constant 0 : index
    %21 = vector.load %arg1[%c3, %c0_20, %c0_21] : memref<27x8x4xbf16, #tpu.memory_space<vmem>>, vector<1x8x4xbf16>
    %22 = vector.shape_cast %21 : vector<1x8x4xbf16> to vector<8x4xbf16>
    %cst_22 = arith.constant dense<0.000000e+00> : vector<8x640xf32>
    %23 = tpu.matmul %22, %20, %cst_22 {dimension_numbers = #tpu.dot_dimension_numbers<[1], [0], [0], [1], [0, 0, 1, 1], [], []>} : vector<8x4xbf16>, vector<4x640xbf16>, vector<8x640xf32> -> vector<8x640xf32>
    %24 = arith.addf %18, %23 : vector<8x640xf32>
    %c0_23 = arith.constant 0 : index
    %c0_24 = arith.constant 0 : index
    %c11 = arith.constant 11 : index
    %25 = vector.load %arg2[%c0_23, %c0_24, %c11] : memref<1x4x896xbf16, #tpu.memory_space<vmem>>, vector<1x4x640xbf16>
    %26 = vector.shape_cast %25 : vector<1x4x640xbf16> to vector<4x640xbf16>
    %c4 = arith.constant 4 : index
    %c0_25 = arith.constant 0 : index
    %c0_26 = arith.constant 0 : index
    %27 = vector.load %arg1[%c4, %c0_25, %c0_26] : memref<27x8x4xbf16, #tpu.memory_space<vmem>>, vector<1x8x4xbf16>
    %28 = vector.shape_cast %27 : vector<1x8x4xbf16> to vector<8x4xbf16>
    %cst_27 = arith.constant dense<0.000000e+00> : vector<8x640xf32>
    %29 = tpu.matmul %28, %26, %cst_27 {dimension_numbers = #tpu.dot_dimension_numbers<[1], [0], [0], [1], [0, 0, 1, 1], [], []>} : vector<8x4xbf16>, vector<4x640xbf16>, vector<8x640xf32> -> vector<8x640xf32>
    %30 = arith.addf %24, %29 : vector<8x640xf32>
    %c0_28 = arith.constant 0 : index
    %c0_29 = arith.constant 0 : index
    %c12 = arith.constant 12 : index
    %31 = vector.load %arg2[%c0_28, %c0_29, %c12] : memref<1x4x896xbf16, #tpu.memory_space<vmem>>, vector<1x4x640xbf16>
    %32 = vector.shape_cast %31 : vector<1x4x640xbf16> to vector<4x640xbf16>
    %c5 = arith.constant 5 : index
    %c0_30 = arith.constant 0 : index
    %c0_31 = arith.constant 0 : index
    %33 = vector.load %arg1[%c5, %c0_30, %c0_31] : memref<27x8x4xbf16, #tpu.memory_space<vmem>>, vector<1x8x4xbf16>
    %34 = vector.shape_cast %33 : vector<1x8x4xbf16> to vector<8x4xbf16>
    %cst_32 = arith.constant dense<0.000000e+00> : vector<8x640xf32>
    %35 = tpu.matmul %34, %32, %cst_32 {dimension_numbers = #tpu.dot_dimension_numbers<[1], [0], [0], [1], [0, 0, 1, 1], [], []>} : vector<8x4xbf16>, vector<4x640xbf16>, vector<8x640xf32> -> vector<8x640xf32>
    %36 = arith.addf %30, %35 : vector<8x640xf32>
    %c0_33 = arith.constant 0 : index
    %c0_34 = arith.constant 0 : index
    %c20 = arith.constant 20 : index
    %37 = vector.load %arg2[%c0_33, %c0_34, %c20] : memref<1x4x896xbf16, #tpu.memory_space<vmem>>, vector<1x4x640xbf16>
    %38 = vector.shape_cast %37 : vector<1x4x640xbf16> to vector<4x640xbf16>
    %c6 = arith.constant 6 : index
    %c0_35 = arith.constant 0 : index
    %c0_36 = arith.constant 0 : index
    %39 = vector.load %arg1[%c6, %c0_35, %c0_36] : memref<27x8x4xbf16, #tpu.memory_space<vmem>>, vector<1x8x4xbf16>
    %40 = vector.shape_cast %39 : vector<1x8x4xbf16> to vector<8x4xbf16>
    %cst_37 = arith.constant dense<0.000000e+00> : vector<8x640xf32>
    %41 = tpu.matmul %40, %38, %cst_37 {dimension_numbers = #tpu.dot_dimension_numbers<[1], [0], [0], [1], [0, 0, 1, 1], [], []>} : vector<8x4xbf16>, vector<4x640xbf16>, vector<8x640xf32> -> vector<8x640xf32>
    %42 = arith.addf %36, %41 : vector<8x640xf32>
    %c0_38 = arith.constant 0 : index
    %c0_39 = arith.constant 0 : index
    %c21 = arith.constant 21 : index
    %43 = vector.load %arg2[%c0_38, %c0_39, %c21] : memref<1x4x896xbf16, #tpu.memory_space<vmem>>, vector<1x4x640xbf16>
    %44 = vector.shape_cast %43 : vector<1x4x640xbf16> to vector<4x640xbf16>
    %c7 = arith.constant 7 : index
    %c0_40 = arith.constant 0 : index
    %c0_41 = arith.constant 0 : index
    %45 = vector.load %arg1[%c7, %c0_40, %c0_41] : memref<27x8x4xbf16, #tpu.memory_space<vmem>>, vector<1x8x4xbf16>
    %46 = vector.shape_cast %45 : vector<1x8x4xbf16> to vector<8x4xbf16>
    %cst_42 = arith.constant dense<0.000000e+00> : vector<8x640xf32>
    %47 = tpu.matmul %46, %44, %cst_42 {dimension_numbers = #tpu.dot_dimension_numbers<[1], [0], [0], [1], [0, 0, 1, 1], [], []>} : vector<8x4xbf16>, vector<4x640xbf16>, vector<8x640xf32> -> vector<8x640xf32>
    %48 = arith.addf %42, %47 : vector<8x640xf32>
    %c0_43 = arith.constant 0 : index
    %c0_44 = arith.constant 0 : index
    %c22 = arith.constant 22 : index
    %49 = vector.load %arg2[%c0_43, %c0_44, %c22] : memref<1x4x896xbf16, #tpu.memory_space<vmem>>, vector<1x4x640xbf16>
    %50 = vector.shape_cast %49 : vector<1x4x640xbf16> to vector<4x640xbf16>
    %c8 = arith.constant 8 : index
    %c0_45 = arith.constant 0 : index
    %c0_46 = arith.constant 0 : index
    %51 = vector.load %arg1[%c8, %c0_45, %c0_46] : memref<27x8x4xbf16, #tpu.memory_space<vmem>>, vector<1x8x4xbf16>
    %52 = vector.shape_cast %51 : vector<1x8x4xbf16> to vector<8x4xbf16>
    %cst_47 = arith.constant dense<0.000000e+00> : vector<8x640xf32>
    %53 = tpu.matmul %52, %50, %cst_47 {dimension_numbers = #tpu.dot_dimension_numbers<[1], [0], [0], [1], [0, 0, 1, 1], [], []>} : vector<8x4xbf16>, vector<4x640xbf16>, vector<8x640xf32> -> vector<8x640xf32>
    %54 = arith.addf %48, %53 : vector<8x640xf32>
    %c0_48 = arith.constant 0 : index
    %c0_49 = arith.constant 0 : index
    %c100 = arith.constant 100 : index
    %55 = vector.load %arg2[%c0_48, %c0_49, %c100] : memref<1x4x896xbf16, #tpu.memory_space<vmem>>, vector<1x4x640xbf16>
    %56 = vector.shape_cast %55 : vector<1x4x640xbf16> to vector<4x640xbf16>
    %c9 = arith.constant 9 : index
    %c0_50 = arith.constant 0 : index
    %c0_51 = arith.constant 0 : index
    %57 = vector.load %arg1[%c9, %c0_50, %c0_51] : memref<27x8x4xbf16, #tpu.memory_space<vmem>>, vector<1x8x4xbf16>
    %58 = vector.shape_cast %57 : vector<1x8x4xbf16> to vector<8x4xbf16>
    %cst_52 = arith.constant dense<0.000000e+00> : vector<8x640xf32>
    %59 = tpu.matmul %58, %56, %cst_52 {dimension_numbers = #tpu.dot_dimension_numbers<[1], [0], [0], [1], [0, 0, 1, 1], [], []>} : vector<8x4xbf16>, vector<4x640xbf16>, vector<8x640xf32> -> vector<8x640xf32>
    %60 = arith.addf %54, %59 : vector<8x640xf32>
    %c0_53 = arith.constant 0 : index
    %c0_54 = arith.constant 0 : index
    %c101 = arith.constant 101 : index
    %61 = vector.load %arg2[%c0_53, %c0_54, %c101] : memref<1x4x896xbf16, #tpu.memory_space<vmem>>, vector<1x4x640xbf16>
    %62 = vector.shape_cast %61 : vector<1x4x640xbf16> to vector<4x640xbf16>
    %c10_55 = arith.constant 10 : index
    %c0_56 = arith.constant 0 : index
    %c0_57 = arith.constant 0 : index
    %63 = vector.load %arg1[%c10_55, %c0_56, %c0_57] : memref<27x8x4xbf16, #tpu.memory_space<vmem>>, vector<1x8x4xbf16>
    %64 = vector.shape_cast %63 : vector<1x8x4xbf16> to vector<8x4xbf16>
    %cst_58 = arith.constant dense<0.000000e+00> : vector<8x640xf32>
    %65 = tpu.matmul %64, %62, %cst_58 {dimension_numbers = #tpu.dot_dimension_numbers<[1], [0], [0], [1], [0, 0, 1, 1], [], []>} : vector<8x4xbf16>, vector<4x640xbf16>, vector<8x640xf32> -> vector<8x640xf32>
    %66 = arith.addf %60, %65 : vector<8x640xf32>
    %c0_59 = arith.constant 0 : index
    %c0_60 = arith.constant 0 : index
    %c102 = arith.constant 102 : index
    %67 = vector.load %arg2[%c0_59, %c0_60, %c102] : memref<1x4x896xbf16, #tpu.memory_space<vmem>>, vector<1x4x640xbf16>
    %68 = vector.shape_cast %67 : vector<1x4x640xbf16> to vector<4x640xbf16>
    %c11_61 = arith.constant 11 : index
    %c0_62 = arith.constant 0 : index
    %c0_63 = arith.constant 0 : index
    %69 = vector.load %arg1[%c11_61, %c0_62, %c0_63] : memref<27x8x4xbf16, #tpu.memory_space<vmem>>, vector<1x8x4xbf16>
    %70 = vector.shape_cast %69 : vector<1x8x4xbf16> to vector<8x4xbf16>
    %cst_64 = arith.constant dense<0.000000e+00> : vector<8x640xf32>
    %71 = tpu.matmul %70, %68, %cst_64 {dimension_numbers = #tpu.dot_dimension_numbers<[1], [0], [0], [1], [0, 0, 1, 1], [], []>} : vector<8x4xbf16>, vector<4x640xbf16>, vector<8x640xf32> -> vector<8x640xf32>
    %72 = arith.addf %66, %71 : vector<8x640xf32>
    %c0_65 = arith.constant 0 : index
    %c0_66 = arith.constant 0 : index
    %c110 = arith.constant 110 : index
    %73 = vector.load %arg2[%c0_65, %c0_66, %c110] : memref<1x4x896xbf16, #tpu.memory_space<vmem>>, vector<1x4x640xbf16>
    %74 = vector.shape_cast %73 : vector<1x4x640xbf16> to vector<4x640xbf16>
    %c12_67 = arith.constant 12 : index
    %c0_68 = arith.constant 0 : index
    %c0_69 = arith.constant 0 : index
    %75 = vector.load %arg1[%c12_67, %c0_68, %c0_69] : memref<27x8x4xbf16, #tpu.memory_space<vmem>>, vector<1x8x4xbf16>
    %76 = vector.shape_cast %75 : vector<1x8x4xbf16> to vector<8x4xbf16>
    %cst_70 = arith.constant dense<0.000000e+00> : vector<8x640xf32>
    %77 = tpu.matmul %76, %74, %cst_70 {dimension_numbers = #tpu.dot_dimension_numbers<[1], [0], [0], [1], [0, 0, 1, 1], [], []>} : vector<8x4xbf16>, vector<4x640xbf16>, vector<8x640xf32> -> vector<8x640xf32>
    %78 = arith.addf %72, %77 : vector<8x640xf32>
    %c0_71 = arith.constant 0 : index
    %c0_72 = arith.constant 0 : index
    %c111 = arith.constant 111 : index
    %79 = vector.load %arg2[%c0_71, %c0_72, %c111] : memref<1x4x896xbf16, #tpu.memory_space<vmem>>, vector<1x4x640xbf16>
    %80 = vector.shape_cast %79 : vector<1x4x640xbf16> to vector<4x640xbf16>
    %c13 = arith.constant 13 : index
    %c0_73 = arith.constant 0 : index
    %c0_74 = arith.constant 0 : index
    %81 = vector.load %arg1[%c13, %c0_73, %c0_74] : memref<27x8x4xbf16, #tpu.memory_space<vmem>>, vector<1x8x4xbf16>
    %82 = vector.shape_cast %81 : vector<1x8x4xbf16> to vector<8x4xbf16>
    %cst_75 = arith.constant dense<0.000000e+00> : vector<8x640xf32>
    %83 = tpu.matmul %82, %80, %cst_75 {dimension_numbers = #tpu.dot_dimension_numbers<[1], [0], [0], [1], [0, 0, 1, 1], [], []>} : vector<8x4xbf16>, vector<4x640xbf16>, vector<8x640xf32> -> vector<8x640xf32>
    %84 = arith.addf %78, %83 : vector<8x640xf32>
    %c0_76 = arith.constant 0 : index
    %c0_77 = arith.constant 0 : index
    %c112 = arith.constant 112 : index
    %85 = vector.load %arg2[%c0_76, %c0_77, %c112] : memref<1x4x896xbf16, #tpu.memory_space<vmem>>, vector<1x4x640xbf16>
    %86 = vector.shape_cast %85 : vector<1x4x640xbf16> to vector<4x640xbf16>
    %c14 = arith.constant 14 : index
    %c0_78 = arith.constant 0 : index
    %c0_79 = arith.constant 0 : index
    %87 = vector.load %arg1[%c14, %c0_78, %c0_79] : memref<27x8x4xbf16, #tpu.memory_space<vmem>>, vector<1x8x4xbf16>
    %88 = vector.shape_cast %87 : vector<1x8x4xbf16> to vector<8x4xbf16>
    %cst_80 = arith.constant dense<0.000000e+00> : vector<8x640xf32>
    %89 = tpu.matmul %88, %86, %cst_80 {dimension_numbers = #tpu.dot_dimension_numbers<[1], [0], [0], [1], [0, 0, 1, 1], [], []>} : vector<8x4xbf16>, vector<4x640xbf16>, vector<8x640xf32> -> vector<8x640xf32>
    %90 = arith.addf %84, %89 : vector<8x640xf32>
    %c0_81 = arith.constant 0 : index
    %c0_82 = arith.constant 0 : index
    %c120 = arith.constant 120 : index
    %91 = vector.load %arg2[%c0_81, %c0_82, %c120] : memref<1x4x896xbf16, #tpu.memory_space<vmem>>, vector<1x4x640xbf16>
    %92 = vector.shape_cast %91 : vector<1x4x640xbf16> to vector<4x640xbf16>
    %c15 = arith.constant 15 : index
    %c0_83 = arith.constant 0 : index
    %c0_84 = arith.constant 0 : index
    %93 = vector.load %arg1[%c15, %c0_83, %c0_84] : memref<27x8x4xbf16, #tpu.memory_space<vmem>>, vector<1x8x4xbf16>
    %94 = vector.shape_cast %93 : vector<1x8x4xbf16> to vector<8x4xbf16>
    %cst_85 = arith.constant dense<0.000000e+00> : vector<8x640xf32>
    %95 = tpu.matmul %94, %92, %cst_85 {dimension_numbers = #tpu.dot_dimension_numbers<[1], [0], [0], [1], [0, 0, 1, 1], [], []>} : vector<8x4xbf16>, vector<4x640xbf16>, vector<8x640xf32> -> vector<8x640xf32>
    %96 = arith.addf %90, %95 : vector<8x640xf32>
    %c0_86 = arith.constant 0 : index
    %c0_87 = arith.constant 0 : index
    %c121 = arith.constant 121 : index
    %97 = vector.load %arg2[%c0_86, %c0_87, %c121] : memref<1x4x896xbf16, #tpu.memory_space<vmem>>, vector<1x4x640xbf16>
    %98 = vector.shape_cast %97 : vector<1x4x640xbf16> to vector<4x640xbf16>
    %c16 = arith.constant 16 : index
    %c0_88 = arith.constant 0 : index
    %c0_89 = arith.constant 0 : index
    %99 = vector.load %arg1[%c16, %c0_88, %c0_89] : memref<27x8x4xbf16, #tpu.memory_space<vmem>>, vector<1x8x4xbf16>
    %100 = vector.shape_cast %99 : vector<1x8x4xbf16> to vector<8x4xbf16>
    %cst_90 = arith.constant dense<0.000000e+00> : vector<8x640xf32>
    %101 = tpu.matmul %100, %98, %cst_90 {dimension_numbers = #tpu.dot_dimension_numbers<[1], [0], [0], [1], [0, 0, 1, 1], [], []>} : vector<8x4xbf16>, vector<4x640xbf16>, vector<8x640xf32> -> vector<8x640xf32>
    %102 = arith.addf %96, %101 : vector<8x640xf32>
    %c0_91 = arith.constant 0 : index
    %c0_92 = arith.constant 0 : index
    %c122 = arith.constant 122 : index
    %103 = vector.load %arg2[%c0_91, %c0_92, %c122] : memref<1x4x896xbf16, #tpu.memory_space<vmem>>, vector<1x4x640xbf16>
    %104 = vector.shape_cast %103 : vector<1x4x640xbf16> to vector<4x640xbf16>
    %c17 = arith.constant 17 : index
    %c0_93 = arith.constant 0 : index
    %c0_94 = arith.constant 0 : index
    %105 = vector.load %arg1[%c17, %c0_93, %c0_94] : memref<27x8x4xbf16, #tpu.memory_space<vmem>>, vector<1x8x4xbf16>
    %106 = vector.shape_cast %105 : vector<1x8x4xbf16> to vector<8x4xbf16>
    %cst_95 = arith.constant dense<0.000000e+00> : vector<8x640xf32>
    %107 = tpu.matmul %106, %104, %cst_95 {dimension_numbers = #tpu.dot_dimension_numbers<[1], [0], [0], [1], [0, 0, 1, 1], [], []>} : vector<8x4xbf16>, vector<4x640xbf16>, vector<8x640xf32> -> vector<8x640xf32>
    %108 = arith.addf %102, %107 : vector<8x640xf32>
    %c0_96 = arith.constant 0 : index
    %c0_97 = arith.constant 0 : index
    %c200 = arith.constant 200 : index
    %109 = vector.load %arg2[%c0_96, %c0_97, %c200] : memref<1x4x896xbf16, #tpu.memory_space<vmem>>, vector<1x4x640xbf16>
    %110 = vector.shape_cast %109 : vector<1x4x640xbf16> to vector<4x640xbf16>
    %c18 = arith.constant 18 : index
    %c0_98 = arith.constant 0 : index
    %c0_99 = arith.constant 0 : index
    %111 = vector.load %arg1[%c18, %c0_98, %c0_99] : memref<27x8x4xbf16, #tpu.memory_space<vmem>>, vector<1x8x4xbf16>
    %112 = vector.shape_cast %111 : vector<1x8x4xbf16> to vector<8x4xbf16>
    %cst_100 = arith.constant dense<0.000000e+00> : vector<8x640xf32>
    %113 = tpu.matmul %112, %110, %cst_100 {dimension_numbers = #tpu.dot_dimension_numbers<[1], [0], [0], [1], [0, 0, 1, 1], [], []>} : vector<8x4xbf16>, vector<4x640xbf16>, vector<8x640xf32> -> vector<8x640xf32>
    %114 = arith.addf %108, %113 : vector<8x640xf32>
    %c0_101 = arith.constant 0 : index
    %c0_102 = arith.constant 0 : index
    %c201 = arith.constant 201 : index
    %115 = vector.load %arg2[%c0_101, %c0_102, %c201] : memref<1x4x896xbf16, #tpu.memory_space<vmem>>, vector<1x4x640xbf16>
    %116 = vector.shape_cast %115 : vector<1x4x640xbf16> to vector<4x640xbf16>
    %c19 = arith.constant 19 : index
    %c0_103 = arith.constant 0 : index
    %c0_104 = arith.constant 0 : index
    %117 = vector.load %arg1[%c19, %c0_103, %c0_104] : memref<27x8x4xbf16, #tpu.memory_space<vmem>>, vector<1x8x4xbf16>
    %118 = vector.shape_cast %117 : vector<1x8x4xbf16> to vector<8x4xbf16>
    %cst_105 = arith.constant dense<0.000000e+00> : vector<8x640xf32>
    %119 = tpu.matmul %118, %116, %cst_105 {dimension_numbers = #tpu.dot_dimension_numbers<[1], [0], [0], [1], [0, 0, 1, 1], [], []>} : vector<8x4xbf16>, vector<4x640xbf16>, vector<8x640xf32> -> vector<8x640xf32>
    %120 = arith.addf %114, %119 : vector<8x640xf32>
    %c0_106 = arith.constant 0 : index
    %c0_107 = arith.constant 0 : index
    %c202 = arith.constant 202 : index
    %121 = vector.load %arg2[%c0_106, %c0_107, %c202] : memref<1x4x896xbf16, #tpu.memory_space<vmem>>, vector<1x4x640xbf16>
    %122 = vector.shape_cast %121 : vector<1x4x640xbf16> to vector<4x640xbf16>
    %c20_108 = arith.constant 20 : index
    %c0_109 = arith.constant 0 : index
    %c0_110 = arith.constant 0 : index
    %123 = vector.load %arg1[%c20_108, %c0_109, %c0_110] : memref<27x8x4xbf16, #tpu.memory_space<vmem>>, vector<1x8x4xbf16>
    %124 = vector.shape_cast %123 : vector<1x8x4xbf16> to vector<8x4xbf16>
    %cst_111 = arith.constant dense<0.000000e+00> : vector<8x640xf32>
    %125 = tpu.matmul %124, %122, %cst_111 {dimension_numbers = #tpu.dot_dimension_numbers<[1], [0], [0], [1], [0, 0, 1, 1], [], []>} : vector<8x4xbf16>, vector<4x640xbf16>, vector<8x640xf32> -> vector<8x640xf32>
    %126 = arith.addf %120, %125 : vector<8x640xf32>
    %c0_112 = arith.constant 0 : index
    %c0_113 = arith.constant 0 : index
    %c210 = arith.constant 210 : index
    %127 = vector.load %arg2[%c0_112, %c0_113, %c210] : memref<1x4x896xbf16, #tpu.memory_space<vmem>>, vector<1x4x640xbf16>
    %128 = vector.shape_cast %127 : vector<1x4x640xbf16> to vector<4x640xbf16>
    %c21_114 = arith.constant 21 : index
    %c0_115 = arith.constant 0 : index
    %c0_116 = arith.constant 0 : index
    %129 = vector.load %arg1[%c21_114, %c0_115, %c0_116] : memref<27x8x4xbf16, #tpu.memory_space<vmem>>, vector<1x8x4xbf16>
    %130 = vector.shape_cast %129 : vector<1x8x4xbf16> to vector<8x4xbf16>
    %cst_117 = arith.constant dense<0.000000e+00> : vector<8x640xf32>
    %131 = tpu.matmul %130, %128, %cst_117 {dimension_numbers = #tpu.dot_dimension_numbers<[1], [0], [0], [1], [0, 0, 1, 1], [], []>} : vector<8x4xbf16>, vector<4x640xbf16>, vector<8x640xf32> -> vector<8x640xf32>
    %132 = arith.addf %126, %131 : vector<8x640xf32>
    %c0_118 = arith.constant 0 : index
    %c0_119 = arith.constant 0 : index
    %c211 = arith.constant 211 : index
    %133 = vector.load %arg2[%c0_118, %c0_119, %c211] : memref<1x4x896xbf16, #tpu.memory_space<vmem>>, vector<1x4x640xbf16>
    %134 = vector.shape_cast %133 : vector<1x4x640xbf16> to vector<4x640xbf16>
    %c22_120 = arith.constant 22 : index
    %c0_121 = arith.constant 0 : index
    %c0_122 = arith.constant 0 : index
    %135 = vector.load %arg1[%c22_120, %c0_121, %c0_122] : memref<27x8x4xbf16, #tpu.memory_space<vmem>>, vector<1x8x4xbf16>
    %136 = vector.shape_cast %135 : vector<1x8x4xbf16> to vector<8x4xbf16>
    %cst_123 = arith.constant dense<0.000000e+00> : vector<8x640xf32>
    %137 = tpu.matmul %136, %134, %cst_123 {dimension_numbers = #tpu.dot_dimension_numbers<[1], [0], [0], [1], [0, 0, 1, 1], [], []>} : vector<8x4xbf16>, vector<4x640xbf16>, vector<8x640xf32> -> vector<8x640xf32>
    %138 = arith.addf %132, %137 : vector<8x640xf32>
    %c0_124 = arith.constant 0 : index
    %c0_125 = arith.constant 0 : index
    %c212 = arith.constant 212 : index
    %139 = vector.load %arg2[%c0_124, %c0_125, %c212] : memref<1x4x896xbf16, #tpu.memory_space<vmem>>, vector<1x4x640xbf16>
    %140 = vector.shape_cast %139 : vector<1x4x640xbf16> to vector<4x640xbf16>
    %c23 = arith.constant 23 : index
    %c0_126 = arith.constant 0 : index
    %c0_127 = arith.constant 0 : index
    %141 = vector.load %arg1[%c23, %c0_126, %c0_127] : memref<27x8x4xbf16, #tpu.memory_space<vmem>>, vector<1x8x4xbf16>
    %142 = vector.shape_cast %141 : vector<1x8x4xbf16> to vector<8x4xbf16>
    %cst_128 = arith.constant dense<0.000000e+00> : vector<8x640xf32>
    %143 = tpu.matmul %142, %140, %cst_128 {dimension_numbers = #tpu.dot_dimension_numbers<[1], [0], [0], [1], [0, 0, 1, 1], [], []>} : vector<8x4xbf16>, vector<4x640xbf16>, vector<8x640xf32> -> vector<8x640xf32>
    %144 = arith.addf %138, %143 : vector<8x640xf32>
    %c0_129 = arith.constant 0 : index
    %c0_130 = arith.constant 0 : index
    %c220 = arith.constant 220 : index
    %145 = vector.load %arg2[%c0_129, %c0_130, %c220] : memref<1x4x896xbf16, #tpu.memory_space<vmem>>, vector<1x4x640xbf16>
    %146 = vector.shape_cast %145 : vector<1x4x640xbf16> to vector<4x640xbf16>
    %c24 = arith.constant 24 : index
    %c0_131 = arith.constant 0 : index
    %c0_132 = arith.constant 0 : index
    %147 = vector.load %arg1[%c24, %c0_131, %c0_132] : memref<27x8x4xbf16, #tpu.memory_space<vmem>>, vector<1x8x4xbf16>
    %148 = vector.shape_cast %147 : vector<1x8x4xbf16> to vector<8x4xbf16>
    %cst_133 = arith.constant dense<0.000000e+00> : vector<8x640xf32>
    %149 = tpu.matmul %148, %146, %cst_133 {dimension_numbers = #tpu.dot_dimension_numbers<[1], [0], [0], [1], [0, 0, 1, 1], [], []>} : vector<8x4xbf16>, vector<4x640xbf16>, vector<8x640xf32> -> vector<8x640xf32>
    %150 = arith.addf %144, %149 : vector<8x640xf32>
    %c0_134 = arith.constant 0 : index
    %c0_135 = arith.constant 0 : index
    %c221 = arith.constant 221 : index
    %151 = vector.load %arg2[%c0_134, %c0_135, %c221] : memref<1x4x896xbf16, #tpu.memory_space<vmem>>, vector<1x4x640xbf16>
    %152 = vector.shape_cast %151 : vector<1x4x640xbf16> to vector<4x640xbf16>
    %c25 = arith.constant 25 : index
    %c0_136 = arith.constant 0 : index
    %c0_137 = arith.constant 0 : index
    %153 = vector.load %arg1[%c25, %c0_136, %c0_137] : memref<27x8x4xbf16, #tpu.memory_space<vmem>>, vector<1x8x4xbf16>
    %154 = vector.shape_cast %153 : vector<1x8x4xbf16> to vector<8x4xbf16>
    %cst_138 = arith.constant dense<0.000000e+00> : vector<8x640xf32>
    %155 = tpu.matmul %154, %152, %cst_138 {dimension_numbers = #tpu.dot_dimension_numbers<[1], [0], [0], [1], [0, 0, 1, 1], [], []>} : vector<8x4xbf16>, vector<4x640xbf16>, vector<8x640xf32> -> vector<8x640xf32>
    %156 = arith.addf %150, %155 : vector<8x640xf32>
    %c0_139 = arith.constant 0 : index
    %c0_140 = arith.constant 0 : index
    %c222 = arith.constant 222 : index
    %157 = vector.load %arg2[%c0_139, %c0_140, %c222] : memref<1x4x896xbf16, #tpu.memory_space<vmem>>, vector<1x4x640xbf16>
    %158 = vector.shape_cast %157 : vector<1x4x640xbf16> to vector<4x640xbf16>
    %c26 = arith.constant 26 : index
    %c0_141 = arith.constant 0 : index
    %c0_142 = arith.constant 0 : index
    %159 = vector.load %arg1[%c26, %c0_141, %c0_142] : memref<27x8x4xbf16, #tpu.memory_space<vmem>>, vector<1x8x4xbf16>
    %160 = vector.shape_cast %159 : vector<1x8x4xbf16> to vector<8x4xbf16>
    %cst_143 = arith.constant dense<0.000000e+00> : vector<8x640xf32>
    %161 = tpu.matmul %160, %158, %cst_143 {dimension_numbers = #tpu.dot_dimension_numbers<[1], [0], [0], [1], [0, 0, 1, 1], [], []>} : vector<8x4xbf16>, vector<4x640xbf16>, vector<8x640xf32> -> vector<8x640xf32>
    %162 = arith.addf %156, %161 : vector<8x640xf32>
    %c0_144 = arith.constant 0 : index
    %c0_145 = arith.constant 0 : index
    %163 = vector.load %arg3[%c0_144, %c0_145] : memref<8x1xf32, #tpu.memory_space<vmem>>, vector<8x1xf32>
    %164 = vector.broadcast %163 : vector<8x1xf32> to vector<8x640xf32>
    %165 = arith.addf %162, %164 : vector<8x640xf32>
    %cst_146 = arith.constant 0.000000e+00 : f32
    %166 = vector.broadcast %cst_146 : f32 to vector<8x640xf32>
    %167 = arith.maximumf %165, %166 : vector<8x640xf32>
    %168 = arith.truncf %167 : vector<8x640xf32> to vector<8x640xbf16>
    %c0_147 = arith.constant 0 : index
    %c0_148 = arith.constant 0 : index
    %c0_149 = arith.constant 0 : index
    %169 = vector.load %arg4[%c0_147, %c0_148, %c0_149] : memref<1x8x640xbf16, #tpu.memory_space<vmem>>, vector<1x8x640xbf16>
    %170 = vector.shape_cast %169 : vector<1x8x640xbf16> to vector<8x640xbf16>
    %171 = vector.shape_cast %168 : vector<8x640xbf16> to vector<1x8x640xbf16>
    tpu.vector_store %arg4[%c0_147, %c0_148, %c0_149], %171 {strides = array<i32>} : memref<1x8x640xbf16, #tpu.memory_space<vmem>>, vector<1x8x640xbf16>,
    return
  }
  func.func @transform_0(%arg0: i32) -> (i32, i32, i32) {
    %c0_i32 = arith.constant 0 : i32
    %c0_i32_0 = arith.constant 0 : i32
    %c0_i32_1 = arith.constant 0 : i32
    %c0_i32_2 = arith.constant 0 : i32
    return %c0_i32, %c0_i32_0, %c0_i32_1 : i32, i32, i32
  }
  func.func @transform_1(%arg0: i32) -> (i32, i32, i32) {
    %c0_i32 = arith.constant 0 : i32
    %c0_i32_0 = arith.constant 0 : i32
    %c0_i32_1 = arith.constant 0 : i32
    return %arg0, %c0_i32, %c0_i32_0 : i32, i32, i32
  }
  func.func @transform_2(%arg0: i32) -> (i32, i32) {
    %c0_i32 = arith.constant 0 : i32
    %c0_i32_0 = arith.constant 0 : i32
    %c0_i32_1 = arith.constant 0 : i32
    return %c0_i32, %c0_i32_0 : i32, i32
  }
  func.func @transform_3(%arg0: i32) -> (i32, i32, i32) {
    %c0_i32 = arith.constant 0 : i32
    %c0_i32_0 = arith.constant 0 : i32
    %c0_i32_1 = arith.constant 0 : i32
    return %arg0, %c0_i32, %c0_i32_0 : i32, i32, i32
  }
}

</mosaic_0001>

<bundles_post_ra>
// kernel: psp_dec.1
= control target key start
LH: loop header
LB: loop body
LE: loop exit
PB: predicated region body
PF: predicated region fallthrough
CT: control target
= control target key end

     0   :  { %s5978_s12 = smov 0   ;;  %s6792_s0 = inlined_call_operand.vmem [shape: bf16[27,8,4], index: 0, kind: input, shape index: {}]   ;;  %s6793_s1 = inlined_call_operand.vmem [shape: bf16[2,4,896], index: 1, kind: input, shape index: {}]   ;;  %s6794_s2 = inlined_call_operand.vmem [shape: f32[8,1], index: 2, kind: input, shape index: {}]   ;;  %s6795_s3 = inlined_call_operand.vmem [shape: bf16[2,8,640], index: 3, kind: output, shape index: {}]  }
   0x1 LB: > { %s5458_s13 = sadd.s32 4294967295, %s5926_s12   ;;  %p5462_p0 = scmp.ge.s32.totalorder %s5926_s12, 1  ;;  %s5926_s12 = sphi %s5978_s12, %s13_s12  }
   0x2   : > { %p137_p1 = scmp.lt.s32.totalorder %s5926_s12, 3 }
   0x4   : > { %p138_p2 = pnand %p5462_p0, %p137_p1 }
   0x5   : > { %p161_p3 = scmp.lt.s32.totalorder (!%p138_p2), %s5458_s13, 1  ;;  %v184_v0 = vlaneseq (!%p138_p2)  ;;  %v5928_v1 = vmov (!%p138_p2), 1983009808   ;;  %v5929_v6 = vmov (!%p138_p2), 0   ;;  %s5930_s18 = smov (!%p138_p2), 127   ;;  %vm217_vm0 = vcmask (!%p138_p2), 1039360  }
   0x6   : > { %141 = sbr.rel (%p138_p2) target bundleno = 685 (0x2ad), region = 32  ;;  %v182_v2 = vunpack.c.l.s4 (!%p138_p2), %v5928_v1  ;;  %275 = vmatprep.mubr.bf16.mxu0 (!%p138_p2), %v5929_v6  ;;  %316 = vmatprep.mubr.bf16.mxu1 (!%p138_p2), %v5929_v6  ;;  %s5931_s19 = smov (!%p138_p2), 126   ;;  %vm227_vm1 = vcmask (!%p138_p2), 1041408   ;;  %v5465_v22 = vld [vmem:[%s6792_s0 + $0x4] sm:$0xf] (!%p138_p2)  ;;  %vm223_vm2 = vcmask (!%p138_p2), 31744  }
   0x7   : > { %v185_v3 = vshrl.u32 (!%p138_p2), %v184_v0, 7  ;;  %5917 = vset.pattern.permute.xlu0 (!%p138_p2), %v5929_v6  ;;  %s5932_s20 = smov (!%p138_p2), 118   ;;  %s5933_s21 = smov (!%p138_p2), 117   ;;  %v5941_v25 = vmov (!%p138_p2), 0.0   ;;  %vm5942_vm3 = vmmov (!%p138_p2), 0   ;;  %vm556_vm4 = vcmask (!%p138_p2), 1031168  }
   0x8   : > { %v183_v4 = vunpack.c.0.s8 (!%p138_p2), %v182_v2  ;;  %s5934_s22 = smov (!%p138_p2), 116   ;;  %s5935_s23 = smov (!%p138_p2), 108   ;;  %v174_v39 = vld [vmem:[%s6792_s0] sm:$0xf] (!%p138_p2)  ;;  %vm750_vm5 = vcmask (!%p138_p2), 965632   ;;  %vm944_vm6 = vcmask (!%p138_p2), 957440  }
   0x9   : > { %s5936_s24 = smov (!%p138_p2), 107   ;;  %s5937_s25 = smov (!%p138_p2), 106   ;;  %v5478_v54 = vld [vmem:[%s6792_s0 + $0x8] sm:$0xf] (!%p138_p2)  ;;  %vm1138_vm7 = vcmask (!%p138_p2), 949248   ;;  %vm1332_vm8 = vcmask (!%p138_p2), 883712  }
   0xa   : > { %v5989_v5 = vsub.s32 (!%p138_p2), %v183_v4, %v185_v3  ;;  %s5938_s26 = smov (!%p138_p2), 28   ;;  %s5939_s27 = smov (!%p138_p2), 27   ;;  %vm1526_vm9 = vcmask (!%p138_p2), 875520   ;;  %vm1720_vm10 = vcmask (!%p138_p2), 867328   ;;  %vm1914_vm11 = vcmask (!%p138_p2), 228352  }
   0xb   : > { %s5940_s28 = smov (!%p138_p2), 26   ;;  %s5943_s6 = smov (!%p138_p2), 18   ;;  %vm2108_vm12 = vcmask (!%p138_p2), 220160   ;;  %vm2302_vm13 = vcmask (!%p138_p2), 211968   ;;  %vm2496_vm14 = vcmask (!%p138_p2), 146432   ;;  %vm2690_vm15 = vcmask (!%p138_p2), 138240  }
   0xc   : > { %s5944_s9 = smov (!%p138_p2), 17   ;;  %s5950_s29 = smov (!%p138_p2), 55  }
   0xd   : > { %s6797_s13 = smov (!%p161_p3, %s5458_s13), 1  ;;  %s5951_s5 = smov 54  }
   0xe   : > { %s5877_s14 = smul.u32 14, %s6797_s13  ;;  %s5952_s8 = smov 46  }
   0xf   : > { %s5953_s11 = smov 45   ;;  %s5954_s16 = smov 44  }
  0x10   : > { %s5996_s17 = scalar_lea.vmem %s6793_s1, %s5877_s14  ;;  %s5945_s14 = smov 16  }
  0x11   : > { %v172_v7 = vld [vmem:[%s5996_s17] sm:$0xff]  ;;  %v6017_v13 = vld.sshfl [vmem:[%s5996_s17 + $0x8] sm:$0x33 pattern:$0x76325410] }
  0x12   : > { %v6001_v8 = vrot.slane %v172_v7, %v5989_v5  ;;  %v180_v9 = vcombine.high %v172_v7, %v172_v7  ;;  %v6023_v14 = vcombine.high %v6017_v13, %v6017_v13  ;;  %v5472_v37 = vld.sshfl [vmem:[%s5996_s17 + $0x8] sm:$0x3 pattern:$0x76325410]  ;;  %v5485_v7 = vld [vmem:[%s6792_s0 + $0xc] sm:$0xf] }
  0x13   : > { %v389_v40 = vsel %vm227_vm1, %v5472_v37, 0 }
  0x14   : > { %205 = vrot.lane.b32.xlu0 %v6001_v8, %s5930_s18  ;;  %v6005_v10 = vrot.slane %v180_v9, %v5989_v5  ;;  %v6009_v11 = vcombine.high %v6001_v8, %v6001_v8  ;;  %v377_v32 = vsel %vm227_vm1, %v6001_v8, 0 }
  0x16   : > { %209 = vrot.lane.b32.xlu1 %v6005_v10, %s5930_s18  ;;  %v6014_v12 = vcombine.high %v6005_v10, %v6005_v10  ;;  %v383_v34 = vsel %vm227_vm1, %v6005_v10, 0 }
  0x18   : > { %207 = vrot.lane.b32.xlu0 %v6009_v11, %s5930_s18 }
  0x1a   : > { %211 = vrot.lane.b32.xlu1 %v6014_v12, %s5930_s18 }
  0x1c   : > { %213 = vrot.lane.b32.xlu0 %v6017_v13, %s5930_s18 }
  0x1e   : > { %215 = vrot.lane.b32.xlu1 %v6023_v14, %s5930_s18  ;;  %s5946_s18 = smov 8  }
  0x20   : > { %544 = vrot.lane.b32.xlu0 %v6001_v8, %s5931_s19 }
  0x22   : > { %546 = vrot.lane.b32.xlu1 %v6009_v11, %s5931_s19 }
  0x24   : > { %548 = vrot.lane.b32.xlu0 %v6005_v10, %s5931_s19 }
  0x26   : > { %550 = vrot.lane.b32.xlu1 %v6014_v12, %s5931_s19 }
  0x28   : > { %552 = vrot.lane.b32.xlu0 %v6017_v13, %s5931_s19 }
  0x2a   : > { %554 = vrot.lane.b32.xlu1 %v6023_v14, %s5931_s19 }
  0x2c   : > { %738 = vrot.lane.b32.xlu0 %v6001_v8, %s5932_s20 }
  0x2e   : > { %740 = vrot.lane.b32.xlu1 %v6009_v11, %s5932_s20 }
  0x30   : > { %742 = vrot.lane.b32.xlu0 %v6005_v10, %s5932_s20 }
  0x32   : > { %744 = vrot.lane.b32.xlu1 %v6014_v12, %s5932_s20 }
  0x34   : > { %746 = vrot.lane.b32.xlu0 %v6017_v13, %s5932_s20 }
  0x36   : > { %748 = vrot.lane.b32.xlu1 %v6023_v14, %s5932_s20  ;;  %s5955_s20 = smov 36  }
  0x38   : > { %932 = vrot.lane.b32.xlu0 %v6001_v8, %s5933_s21 }
  0x3a   : > { %934 = vrot.lane.b32.xlu1 %v6009_v11, %s5933_s21 }
  0x3c   : > { %936 = vrot.lane.b32.xlu0 %v6005_v10, %s5933_s21 }
  0x3e   : > { %938 = vrot.lane.b32.xlu1 %v6014_v12, %s5933_s21 }
  0x40   : > { %940 = vrot.lane.b32.xlu0 %v6017_v13, %s5933_s21 }
  0x42   : > { %942 = vrot.lane.b32.xlu1 %v6023_v14, %s5933_s21  ;;  %s5947_s21 = smov 7  }
  0x44   : > { %1126 = vrot.lane.b32.xlu0 %v6001_v8, %s5934_s22 }
  0x46   : > { %1128 = vrot.lane.b32.xlu1 %v6009_v11, %s5934_s22 }
  0x48   : > { %1130 = vrot.lane.b32.xlu0 %v6005_v10, %s5934_s22 }
  0x4a   : > { %1132 = vrot.lane.b32.xlu1 %v6014_v12, %s5934_s22 }
  0x4c   : > { %1134 = vrot.lane.b32.xlu0 %v6017_v13, %s5934_s22 }
  0x4e   : > { %1136 = vrot.lane.b32.xlu1 %v6023_v14, %s5934_s22 }
  0x50   : > { %1320 = vrot.lane.b32.xlu0 %v6001_v8, %s5935_s23 }
  0x52   : > { %1322 = vrot.lane.b32.xlu1 %v6009_v11, %s5935_s23 }
  0x54   : > { %1324 = vrot.lane.b32.xlu0 %v6005_v10, %s5935_s23 }
  0x56   : > { %1326 = vrot.lane.b32.xlu1 %v6014_v12, %s5935_s23 }
  0x58   : > { %1328 = vrot.lane.b32.xlu0 %v6017_v13, %s5935_s23 }
  0x5a   : > { %1330 = vrot.lane.b32.xlu1 %v6023_v14, %s5935_s23  ;;  %s5956_s23 = smov 35  }
  0x5c   : > { %1514 = vrot.lane.b32.xlu0 %v6001_v8, %s5936_s24 }
  0x5e   : > { %1516 = vrot.lane.b32.xlu1 %v6009_v11, %s5936_s24 }
  0x60   : > { %1518 = vrot.lane.b32.xlu0 %v6005_v10, %s5936_s24 }
  0x62   : > { %1520 = vrot.lane.b32.xlu1 %v6014_v12, %s5936_s24 }
  0x64   : > { %1522 = vrot.lane.b32.xlu0 %v6017_v13, %s5936_s24 }
  0x66   : > { %1524 = vrot.lane.b32.xlu1 %v6023_v14, %s5936_s24  ;;  %s5948_s24 = smov 6  }
  0x68   : > { %1708 = vrot.lane.b32.xlu0 %v6001_v8, %s5937_s25 }
  0x6a   : > { %1710 = vrot.lane.b32.xlu1 %v6009_v11, %s5937_s25 }
  0x6c   : > { %1712 = vrot.lane.b32.xlu0 %v6005_v10, %s5937_s25 }
  0x6e   : > { %1714 = vrot.lane.b32.xlu1 %v6014_v12, %s5937_s25 }
  0x70   : > { %1716 = vrot.lane.b32.xlu0 %v6017_v13, %s5937_s25 }
  0x72   : > { %1718 = vrot.lane.b32.xlu1 %v6023_v14, %s5937_s25 }
  0x74   : > { %1902 = vrot.lane.b32.xlu0 %v6001_v8, %s5938_s26 }
  0x76   : > { %1904 = vrot.lane.b32.xlu1 %v6009_v11, %s5938_s26 }
  0x78   : > { %1906 = vrot.lane.b32.xlu0 %v6005_v10, %s5938_s26 }
  0x7a   : > { %1908 = vrot.lane.b32.xlu1 %v6014_v12, %s5938_s26 }
  0x7c   : > { %1910 = vrot.lane.b32.xlu0 %v6017_v13, %s5938_s26 }
  0x7e   : > { %1912 = vrot.lane.b32.xlu1 %v6023_v14, %s5938_s26  ;;  %s5957_s26 = smov 34  }
  0x80   : > { %2096 = vrot.lane.b32.xlu0 %v6001_v8, %s5939_s27 }
  0x82   : > { %2098 = vrot.lane.b32.xlu1 %v6009_v11, %s5939_s27 }
  0x84   : > { %2100 = vrot.lane.b32.xlu0 %v6005_v10, %s5939_s27 }
  0x86   : > { %v206_v15 = vpop.permute.xlu0 %205  ;;  %2102 = vrot.lane.b32.xlu1 %v6014_v12, %s5939_s27 }
  0x88   : > { %v210_v16 = vpop.permute.xlu1 %209  ;;  %2104 = vrot.lane.b32.xlu0 %v6017_v13, %s5939_s27 }
  0x8a   : > { %v208_v17 = vpop.permute.xlu0 %207  ;;  %2106 = vrot.lane.b32.xlu1 %v6023_v14, %s5939_s27  ;;  %s5949_s27 = smov 56  }
  0x8b   : > { %v219_v18 = vsel %vm217_vm0, %v208_v17, %v210_v16  ;;  %v218_v19 = vsel %vm217_vm0, %v206_v15, %v208_v17 }
  0x8c   : > { %5467 = vmatprep.subr.msk.bf16.mxu0 %vm227_vm1, %v219_v18  ;;  %v212_v20 = vpop.permute.xlu1 %211  ;;  %v229_v21 = vsel %vm227_vm1, %v218_v19, 0  ;;  %2290 = vrot.lane.b32.xlu0 %v6001_v8, %s5940_s28 }
  0x8d   : > { %244 = vmatpush1.bf16.msra.mxu0 %v229_v21  ;;  %v220_v23 = vsel %vm217_vm0, %v210_v16, %v212_v20 }
  0x8e   : > { %v214_v24 = vpop.permute.xlu0 %213  ;;  %5715 = vmatprep.subr.bf16.mxu0 %v5941_v25  ;;  %2292 = vrot.lane.b32.xlu1 %v6009_v11, %s5940_s28  ;;  %v235_v28 = vsel %vm227_vm1, %v220_v23, 0 }
  0x8f   : > { %v221_v26 = vsel %vm217_vm0, %v212_v20, %v214_v24 }
  0x90   : > { %5468 = vmatmul.mubr.msk.bf16.vlgmr.msra.gmra.mrb[0].mxu0 %vm223_vm2, %v5465_v22  ;;  %5469 = vmatprep.subr.msk.bf16.mxu1 %vm227_vm1, %v221_v26  ;;  %v216_v27 = vpop.permute.xlu1 %215 }
  0x91   : > { %v222_v29 = vsel %vm217_vm0, %v214_v24, %v216_v27  ;;  %285 = vmatpush1.bf16.msra.mxu1 %v235_v28  ;;  %2294 = vrot.lane.b32.xlu0 %v6005_v10, %s5940_s28  ;;  %vm2884_vm0 = vcmask 130048  }
  0x92   : > { %v241_v30 = vsel %vm227_vm1, %v222_v29, 0  ;;  %5717 = vmatprep.mubr.msk.bf16.mxu0 %vm5942_vm3, %v5941_v25  ;;  %5473 = vmatprep.subr.msk.bf16.mxu1 %vm227_vm1, %v6009_v11  ;;  %v545_v31 = vpop.permute.xlu0 %544  ;;  %v5492_v29 = vld [vmem:[%s6792_s0 + $0x10] sm:$0xf] }
  0x93   : > { %5716 = vmatpush3.bf16.msra.mxu0 %v241_v30  ;;  %2296 = vrot.lane.b32.xlu1 %v6014_v12, %s5940_s28 }
  0x94   : > { %5470 = vmatmul.mubr.msk.bf16.vlgmr.msra.gmra.mrb[0].mxu1 %vm223_vm2, %v5465_v22  ;;  %5475 = vmatprep.subr.msk.bf16.mxu0 %vm227_vm1, %v6014_v12  ;;  %v547_v33 = vpop.permute.xlu1 %546 }
  0x95   : > { %392 = vmatpush1.bf16.msra.mxu1 %v377_v32  ;;  %2298 = vrot.lane.b32.xlu0 %v6017_v13, %s5940_s28  ;;  %v557_v42 = vsel %vm556_vm4, %v545_v31, %v547_v33 }
  0x96   : > { %423 = vmatprep.mubr.bf16.mxu1 %v5929_v6  ;;  %v549_v35 = vpop.permute.xlu0 %548  ;;  %5721 = vmatprep.subr.bf16.mxu1 %v5941_v25  ;;  %v566_v45 = vsel %vm227_vm1, %v557_v42, 0 }
  0x97   : > { %2300 = vrot.lane.b32.xlu1 %v6023_v14, %s5940_s28  ;;  %v558_v36 = vsel %vm556_vm4, %v547_v33, %v549_v35 }
  0x98   : > { %5718 = vmatmul.mubr.msk.bf16.vlgmr.msra.gmra.mrb[4].mxu0 %vm223_vm2, %v5465_v22  ;;  %v551_v38 = vpop.permute.xlu1 %550 }
  0x99   : > { %433 = vmatpush1.bf16.msra.mxu0 %v383_v34  ;;  %2484 = vrot.lane.b32.xlu0 %v6001_v8, %s5943_s6  ;;  %v559_v47 = vsel %vm556_vm4, %v549_v35, %v551_v38 }
  0x9a   : > { %464 = vmatprep.mubr.bf16.mxu0 %v5929_v6  ;;  %5480 = vmatprep.subr.msk.bf16.mxu0 %vm227_vm1, %v558_v36  ;;  %v553_v41 = vpop.permute.xlu0 %552  ;;  %v572_v49 = vsel %vm227_vm1, %v559_v47, 0 }
  0x9b   : > { %2486 = vrot.lane.b32.xlu1 %v6009_v11, %s5943_s6  ;;  %v560_v43 = vsel %vm556_vm4, %v551_v38, %v553_v41 }
  0x9c   : > { %5474 = vmatmul.mubr.msk.bf16.vlgmr.msra.gmra.mrb[4].mxu1 %vm223_vm2, %v174_v39  ;;  %v555_v44 = vpop.permute.xlu1 %554 }
  0x9d   : > { %5722 = vmatpush3.bf16.msra.mxu1 %v389_v40  ;;  %2488 = vrot.lane.b32.xlu0 %v6005_v10, %s5943_s6  ;;  %v561_v51 = vsel %vm556_vm4, %v553_v41, %v555_v44  ;;  %v5499_v44 = vld [vmem:[%s6792_s0 + $0x14] sm:$0xf]  ;;  %vm3078_vm4 = vcmask 64512  }
  0x9e   : > { %5723 = vmatprep.mubr.msk.bf16.mxu1 %vm5942_vm3, %v5941_v25  ;;  %5482 = vmatprep.subr.msk.bf16.mxu1 %vm227_vm1, %v560_v43  ;;  %v739_v46 = vpop.permute.xlu0 %738  ;;  %v578_v55 = vsel %vm227_vm1, %v561_v51, 0 }
  0x9f   : > { %2490 = vrot.lane.b32.xlu1 %v6014_v12, %s5943_s6 }
  0xa0   : > { %5476 = vmatmul.mubr.msk.bf16.vlgmr.msra.gmra.mrb[8].mxu0 %vm223_vm2, %v174_v39  ;;  %v741_v48 = vpop.permute.xlu1 %740 }
  0xa1   : > { %581 = vmatpush1.bf16.msra.mxu0 %v566_v45  ;;  %2492 = vrot.lane.b32.xlu0 %v6017_v13, %s5943_s6  ;;  %v751_v57 = vsel %vm750_vm5, %v739_v46, %v741_v48 }
  0xa2   : > { %612 = vmatprep.mubr.bf16.mxu0 %v5929_v6  ;;  %5727 = vmatprep.subr.bf16.mxu0 %v5941_v25  ;;  %v743_v50 = vpop.permute.xlu0 %742  ;;  %v760_v60 = vsel %vm227_vm1, %v751_v57, 0 }
  0xa3   : > { %2494 = vrot.lane.b32.xlu1 %v6023_v14, %s5943_s6  ;;  %v752_v52 = vsel %vm750_vm5, %v741_v48, %v743_v50 }
  0xa4   : > { %5724 = vmatmul.mubr.msk.bf16.vlgmr.msra.gmra.mrb[8].mxu1 %vm223_vm2, %v174_v39  ;;  %v745_v53 = vpop.permute.xlu1 %744 }
  0xa5   : > { %622 = vmatpush1.bf16.msra.mxu1 %v572_v49  ;;  %2678 = vrot.lane.b32.xlu0 %v6001_v8, %s5944_s9  ;;  %v753_v62 = vsel %vm750_vm5, %v743_v50, %v745_v53 }
  0xa6   : > { %653 = vmatprep.mubr.bf16.mxu1 %v5929_v6  ;;  %5487 = vmatprep.subr.msk.bf16.mxu1 %vm227_vm1, %v752_v52  ;;  %v747_v56 = vpop.permute.xlu0 %746  ;;  %v766_v0 = vsel %vm227_vm1, %v753_v62, 0 }
  0xa7   : > { %2680 = vrot.lane.b32.xlu1 %v6009_v11, %s5944_s9  ;;  %v754_v58 = vsel %vm750_vm5, %v745_v53, %v747_v56 }
  0xa8   : > { %5481 = vmatmul.mubr.msk.bf16.vlgmr.msra.gmra.mrb[12].mxu0 %vm223_vm2, %v5478_v54  ;;  %v749_v59 = vpop.permute.xlu1 %748 }
  0xa9   : > { %5728 = vmatpush3.bf16.msra.mxu0 %v578_v55  ;;  %2682 = vrot.lane.b32.xlu0 %v6005_v10, %s5944_s9  ;;  %v755_v2 = vsel %vm750_vm5, %v747_v56, %v749_v59  ;;  %v5506_v59 = vld [vmem:[%s6792_s0 + $0x18] sm:$0xf]  ;;  %vm3272_vm5 = vcmask 56320  }
  0xaa   : > { %5729 = vmatprep.mubr.msk.bf16.mxu0 %vm5942_vm3, %v5941_v25  ;;  %5489 = vmatprep.subr.msk.bf16.mxu0 %vm227_vm1, %v754_v58  ;;  %v933_v61 = vpop.permute.xlu0 %932  ;;  %v772_v9 = vsel %vm227_vm1, %v755_v2, 0  ;;  %v3617_v2 = vld [vmem:[%s5996_s17 + $0x2] sm:$0xff] }
  0xab   : > { %2684 = vrot.lane.b32.xlu1 %v6014_v12, %s5944_s9 }
  0xac   : > { %5483 = vmatmul.mubr.msk.bf16.vlgmr.msra.gmra.mrb[12].mxu1 %vm223_vm2, %v5478_v54  ;;  %v935_v63 = vpop.permute.xlu1 %934 }
  0xad   : > { %775 = vmatpush1.bf16.msra.mxu1 %v760_v60  ;;  %2686 = vrot.lane.b32.xlu0 %v6017_v13, %s5944_s9  ;;  %v945_v16 = vsel %vm944_vm6, %v933_v61, %v935_v63 }
  0xae   : > { %806 = vmatprep.mubr.bf16.mxu1 %v5929_v6  ;;  %5733 = vmatprep.subr.bf16.mxu1 %v5941_v25  ;;  %v937_v1 = vpop.permute.xlu0 %936  ;;  %v954_v19 = vsel %vm227_vm1, %v945_v16, 0 }
  0xaf   : > { %2688 = vrot.lane.b32.xlu1 %v6023_v14, %s5944_s9  ;;  %v946_v3 = vsel %vm944_vm6, %v935_v63, %v937_v1 }
  0xb0   : > { %5730 = vmatmul.mubr.msk.bf16.vlgmr.msra.gmra.mrb[16].mxu0 %vm223_vm2, %v5478_v54  ;;  %v939_v4 = vpop.permute.xlu1 %938 }
  0xb1   : > { %816 = vmatpush1.bf16.msra.mxu0 %v766_v0  ;;  %2872 = vrot.lane.b32.xlu0 %v6001_v8, %s5945_s14  ;;  %v947_v21 = vsel %vm944_vm6, %v937_v1, %v939_v4 }
  0xb2   : > { %847 = vmatprep.mubr.bf16.mxu0 %v5929_v6  ;;  %5494 = vmatprep.subr.msk.bf16.mxu0 %vm227_vm1, %v946_v3  ;;  %v941_v15 = vpop.permute.xlu0 %940  ;;  %v960_v23 = vsel %vm227_vm1, %v947_v21, 0 }
  0xb3   : > { %2874 = vrot.lane.b32.xlu1 %v6009_v11, %s5945_s14  ;;  %v948_v17 = vsel %vm944_vm6, %v939_v4, %v941_v15  ;;  %v3623_v4 = vcombine.high %v3617_v2, %v3617_v2 }
  0xb4   : > { %5488 = vmatmul.mubr.msk.bf16.vlgmr.msra.gmra.mrb[16].mxu1 %vm223_vm2, %v5485_v7  ;;  %v943_v18 = vpop.permute.xlu1 %942 }
  0xb5   : > { %5734 = vmatpush3.bf16.msra.mxu1 %v772_v9  ;;  %2876 = vrot.lane.b32.xlu0 %v6005_v10, %s5945_s14  ;;  %v949_v26 = vsel %vm944_vm6, %v941_v15, %v943_v18  ;;  %vm3466_vm6 = vcmask 48128  }
  0xb6   : > { %5735 = vmatprep.mubr.msk.bf16.mxu1 %vm5942_vm3, %v5941_v25  ;;  %5496 = vmatprep.subr.msk.bf16.mxu1 %vm227_vm1, %v948_v17  ;;  %v1127_v20 = vpop.permute.xlu0 %1126  ;;  %v966_v30 = vsel %vm227_vm1, %v949_v26, 0  ;;  %v5513_v17 = vld [vmem:[%s6792_s0 + $0x1c] sm:$0xf] }
  0xb7   : > { %2878 = vrot.lane.b32.xlu1 %v6014_v12, %s5945_s14  ;;  %v6327_v26 = vld.sshfl [vmem:[%s5996_s17 + $0xa] sm:$0x33 pattern:$0x76325410] }
  0xb8   : > { %5490 = vmatmul.mubr.msk.bf16.vlgmr.msra.gmra.mrb[20].mxu0 %vm223_vm2, %v5485_v7  ;;  %v1129_v22 = vpop.permute.xlu1 %1128 }
  0xb9   : > { %969 = vmatpush1.bf16.msra.mxu0 %v954_v19  ;;  %2880 = vrot.lane.b32.xlu0 %v6017_v13, %s5945_s14  ;;  %v1139_v32 = vsel %vm1138_vm7, %v1127_v20, %v1129_v22 }
  0xba   : > { %1000 = vmatprep.mubr.bf16.mxu0 %v5929_v6  ;;  %5739 = vmatprep.subr.bf16.mxu0 %v5941_v25  ;;  %v1131_v24 = vpop.permute.xlu0 %1130  ;;  %v1148_v35 = vsel %vm227_vm1, %v1139_v32, 0 }
  0xbb   : > { %2882 = vrot.lane.b32.xlu1 %v6023_v14, %s5945_s14  ;;  %v1140_v27 = vsel %vm1138_vm7, %v1129_v22, %v1131_v24 }
  0xbc   : > { %5736 = vmatmul.mubr.msk.bf16.vlgmr.msra.gmra.mrb[20].mxu1 %vm223_vm2, %v5485_v7  ;;  %v1133_v28 = vpop.permute.xlu1 %1132 }
  0xbd   : > { %1010 = vmatpush1.bf16.msra.mxu1 %v960_v23  ;;  %3066 = vrot.lane.b32.xlu0 %v6001_v8, %s5946_s18  ;;  %v1141_v37 = vsel %vm1138_vm7, %v1131_v24, %v1133_v28 }
  0xbe   : > { %1041 = vmatprep.mubr.bf16.mxu1 %v5929_v6  ;;  %5501 = vmatprep.subr.msk.bf16.mxu1 %vm227_vm1, %v1140_v27  ;;  %v1135_v31 = vpop.permute.xlu0 %1134  ;;  %v1154_v39 = vsel %vm227_vm1, %v1141_v37, 0 }
  0xbf   : > { %3068 = vrot.lane.b32.xlu1 %v6009_v11, %s5946_s18  ;;  %v1142_v33 = vsel %vm1138_vm7, %v1133_v28, %v1135_v31  ;;  %v6334_v28 = vcombine.high %v6327_v26, %v6327_v26 }
  0xc0   : > { %5495 = vmatmul.mubr.msk.bf16.vlgmr.msra.gmra.mrb[24].mxu0 %vm223_vm2, %v5492_v29  ;;  %v1137_v34 = vpop.permute.xlu1 %1136 }
  0xc1   : > { %5740 = vmatpush3.bf16.msra.mxu0 %v966_v30  ;;  %3070 = vrot.lane.b32.xlu0 %v6005_v10, %s5946_s18  ;;  %v1143_v41 = vsel %vm1138_vm7, %v1135_v31, %v1137_v34  ;;  %vm3660_vm7 = vcmask 457728  }
  0xc2   : > { %5741 = vmatprep.mubr.msk.bf16.mxu0 %vm5942_vm3, %v5941_v25  ;;  %5503 = vmatprep.subr.msk.bf16.mxu0 %vm227_vm1, %v1142_v33  ;;  %v1321_v36 = vpop.permute.xlu0 %1320  ;;  %v1160_v45 = vsel %vm227_vm1, %v1143_v41, 0 }
  0xc3   : > { %3072 = vrot.lane.b32.xlu1 %v6014_v12, %s5946_s18 }
  0xc4   : > { %5497 = vmatmul.mubr.msk.bf16.vlgmr.msra.gmra.mrb[24].mxu1 %vm223_vm2, %v5492_v29  ;;  %v1323_v38 = vpop.permute.xlu1 %1322 }
  0xc5   : > { %1163 = vmatpush1.bf16.msra.mxu1 %v1148_v35  ;;  %3074 = vrot.lane.b32.xlu0 %v6017_v13, %s5946_s18  ;;  %v1333_v47 = vsel %vm1332_vm8, %v1321_v36, %v1323_v38  ;;  %v5520_v35 = vld [vmem:[%s6792_s0 + $0x20] sm:$0xf] }
  0xc6   : > { %1194 = vmatprep.mubr.bf16.mxu1 %v5929_v6  ;;  %5745 = vmatprep.subr.bf16.mxu1 %v5941_v25  ;;  %v1325_v40 = vpop.permute.xlu0 %1324  ;;  %v1342_v50 = vsel %vm227_vm1, %v1333_v47, 0 }
  0xc7   : > { %3076 = vrot.lane.b32.xlu1 %v6023_v14, %s5946_s18  ;;  %v1334_v42 = vsel %vm1332_vm8, %v1323_v38, %v1325_v40 }
  0xc8   : > { %5742 = vmatmul.mubr.msk.bf16.vlgmr.msra.gmra.mrb[28].mxu0 %vm223_vm2, %v5492_v29  ;;  %v1327_v43 = vpop.permute.xlu1 %1326 }
  0xc9   : > { %1204 = vmatpush1.bf16.msra.mxu0 %v1154_v39  ;;  %3260 = vrot.lane.b32.xlu0 %v6001_v8, %s5947_s21  ;;  %v1335_v52 = vsel %vm1332_vm8, %v1325_v40, %v1327_v43 }
  0xca   : > { %1235 = vmatprep.mubr.bf16.mxu0 %v5929_v6  ;;  %5508 = vmatprep.subr.msk.bf16.mxu0 %vm227_vm1, %v1334_v42  ;;  %v1329_v46 = vpop.permute.xlu0 %1328  ;;  %v1348_v54 = vsel %vm227_vm1, %v1335_v52, 0 }
  0xcb   : > { %3262 = vrot.lane.b32.xlu1 %v6009_v11, %s5947_s21  ;;  %v1336_v48 = vsel %vm1332_vm8, %v1327_v43, %v1329_v46 }
  0xcc   : > { %5502 = vmatmul.mubr.msk.bf16.vlgmr.msra.gmra.mrb[28].mxu1 %vm223_vm2, %v5499_v44  ;;  %v1331_v49 = vpop.permute.xlu1 %1330 }
  0xcd   : > { %5746 = vmatpush3.bf16.msra.mxu1 %v1160_v45  ;;  %3264 = vrot.lane.b32.xlu0 %v6005_v10, %s5947_s21  ;;  %v1337_v56 = vsel %vm1332_vm8, %v1329_v46, %v1331_v49  ;;  %vm3854_vm8 = vcmask 449536  }
  0xce   : > { %5747 = vmatprep.mubr.msk.bf16.mxu1 %vm5942_vm3, %v5941_v25  ;;  %5510 = vmatprep.subr.msk.bf16.mxu1 %vm227_vm1, %v1336_v48  ;;  %v1515_v51 = vpop.permute.xlu0 %1514  ;;  %v1354_v60 = vsel %vm227_vm1, %v1337_v56, 0 }
  0xcf   : > { %3266 = vrot.lane.b32.xlu1 %v6014_v12, %s5947_s21 }
  0xd0   : > { %5504 = vmatmul.mubr.msk.bf16.vlgmr.msra.gmra.mrb[32].mxu0 %vm223_vm2, %v5499_v44  ;;  %v1517_v53 = vpop.permute.xlu1 %1516 }
  0xd1   : > { %1357 = vmatpush1.bf16.msra.mxu0 %v1342_v50  ;;  %3268 = vrot.lane.b32.xlu0 %v6017_v13, %s5947_s21  ;;  %v1527_v62 = vsel %vm1526_vm9, %v1515_v51, %v1517_v53  ;;  %v5527_v50 = vld [vmem:[%s6792_s0 + $0x24] sm:$0xf] }
  0xd2   : > { %1388 = vmatprep.mubr.bf16.mxu0 %v5929_v6  ;;  %5751 = vmatprep.subr.bf16.mxu0 %v5941_v25  ;;  %v1519_v55 = vpop.permute.xlu0 %1518 }
  0xd3   : > { %3270 = vrot.lane.b32.xlu1 %v6023_v14, %s5947_s21  ;;  %v1528_v57 = vsel %vm1526_vm9, %v1517_v53, %v1519_v55 }
  0xd4   : > { %5748 = vmatmul.mubr.msk.bf16.vlgmr.msra.gmra.mrb[32].mxu1 %vm223_vm2, %v5499_v44  ;;  %v1521_v58 = vpop.permute.xlu1 %1520 }
  0xd5   : > { %1398 = vmatpush1.bf16.msra.mxu1 %v1348_v54  ;;  %3454 = vrot.lane.b32.xlu0 %v6001_v8, %s5948_s24  ;;  %v1536_v8 = vsel %vm227_vm1, %v1527_v62, 0 }
  0xd6   : > { %1429 = vmatprep.mubr.bf16.mxu1 %v5929_v6  ;;  %5515 = vmatprep.subr.msk.bf16.mxu1 %vm227_vm1, %v1528_v57  ;;  %v1523_v61 = vpop.permute.xlu0 %1522 }
  0xd7   : > { %3456 = vrot.lane.b32.xlu1 %v6009_v11, %s5948_s24  ;;  %v1530_v63 = vsel %vm1526_vm9, %v1521_v58, %v1523_v61  ;;  %v1529_v11 = vsel %vm1526_vm9, %v1519_v55, %v1521_v58 }
  0xd8   : > { %5509 = vmatmul.mubr.msk.bf16.vlgmr.msra.gmra.mrb[36].mxu0 %vm223_vm2, %v5506_v59  ;;  %v1525_v0 = vpop.permute.xlu1 %1524  ;;  %v1542_v7 = vsel %vm227_vm1, %v1529_v11, 0 }
  0xd9   : > { %5752 = vmatpush3.bf16.msra.mxu0 %v1354_v60  ;;  %3458 = vrot.lane.b32.xlu0 %v6005_v10, %s5948_s24  ;;  %v6286_v10 = vrot.slane %v3617_v2, %v5989_v5 }
  0xda   : > { %5753 = vmatprep.mubr.msk.bf16.mxu0 %vm5942_vm3, %v5941_v25  ;;  %5517 = vmatprep.subr.msk.bf16.mxu0 %vm227_vm1, %v1530_v63  ;;  %v1709_v1 = vpop.permute.xlu0 %1708 }
  0xdb   : > { %3460 = vrot.lane.b32.xlu1 %v6014_v12, %s5948_s24  ;;  %v1531_v12 = vsel %vm1526_vm9, %v1523_v61, %v1525_v0  ;;  %v5534_v0 = vld [vmem:[%s6792_s0 + $0x28] sm:$0xf]  ;;  %vm4048_vm9 = vcmask 441344  }
  0xdc   : > { %5511 = vmatmul.mubr.msk.bf16.vlgmr.msra.gmra.mrb[36].mxu1 %vm223_vm2, %v5506_v59  ;;  %v1711_v3 = vpop.permute.xlu1 %1710  ;;  %v1548_v18 = vsel %vm227_vm1, %v1531_v12, 0 }
  0xdd   : > { %1551 = vmatpush1.bf16.msra.mxu1 %v1536_v8  ;;  %3462 = vrot.lane.b32.xlu0 %v6017_v13, %s5948_s24  ;;  %v6297_v13 = vcombine.high %v6286_v10, %v6286_v10  ;;  %v1721_v20 = vsel %vm1720_vm10, %v1709_v1, %v1711_v3 }
  0xde   : > { %1582 = vmatprep.mubr.bf16.mxu1 %v5929_v6  ;;  %5757 = vmatprep.subr.bf16.mxu1 %v5941_v25  ;;  %v1713_v9 = vpop.permute.xlu0 %1712  ;;  %v1730_v23 = vsel %vm227_vm1, %v1721_v20, 0  ;;  %v5541_v20 = vld [vmem:[%s6792_s0 + $0x2c] sm:$0xf] }
  0xdf   : > { %3464 = vrot.lane.b32.xlu1 %v6023_v14, %s5948_s24  ;;  %v1722_v15 = vsel %vm1720_vm10, %v1711_v3, %v1713_v9  ;;  %v6306_v14 = vrot.slane %v3623_v4, %v5989_v5 }
  0xe0   : > { %5754 = vmatmul.mubr.msk.bf16.vlgmr.msra.gmra.mrb[40].mxu0 %vm223_vm2, %v5506_v59  ;;  %v1715_v16 = vpop.permute.xlu1 %1714 }
  0xe1   : > { %1592 = vmatpush1.bf16.msra.mxu0 %v1542_v7  ;;  %3648 = vrot.lane.b32.xlu0 %v6286_v10, %s5949_s27  ;;  %v6317_v22 = vcombine.high %v6306_v14, %v6306_v14  ;;  %v1723_v27 = vsel %vm1720_vm10, %v1713_v9, %v1715_v16 }
  0xe2   : > { %1623 = vmatprep.mubr.bf16.mxu0 %v5929_v6  ;;  %5522 = vmatprep.subr.msk.bf16.mxu0 %vm227_vm1, %v1722_v15  ;;  %v1717_v19 = vpop.permute.xlu0 %1716  ;;  %v1736_v30 = vsel %vm227_vm1, %v1723_v27, 0 }
  0xe3   : > { %3650 = vrot.lane.b32.xlu1 %v6297_v13, %s5949_s27  ;;  %v1724_v21 = vsel %vm1720_vm10, %v1715_v16, %v1717_v19 }
  0xe4   : > { %5516 = vmatmul.mubr.msk.bf16.vlgmr.msra.gmra.mrb[40].mxu1 %vm223_vm2, %v5513_v17  ;;  %v1719_v5 = vpop.permute.xlu1 %1718 }
  0xe5   : > { %5758 = vmatpush3.bf16.msra.mxu1 %v1548_v18  ;;  %3652 = vrot.lane.b32.xlu0 %v6306_v14, %s5949_s27  ;;  %v1725_v32 = vsel %vm1720_vm10, %v1717_v19, %v1719_v5  ;;  %vm4242_vm10 = vcmask 375808  }
  0xe6   : > { %5759 = vmatprep.mubr.msk.bf16.mxu1 %vm5942_vm3, %v5941_v25  ;;  %5524 = vmatprep.subr.msk.bf16.mxu1 %vm227_vm1, %v1724_v21  ;;  %v1903_v24 = vpop.permute.xlu0 %1902  ;;  %v1742_v36 = vsel %vm227_vm1, %v1725_v32, 0 }
  0xe7   : > { %3654 = vrot.lane.b32.xlu1 %v6317_v22, %s5949_s27 }
  0xe8   : > { %5518 = vmatmul.mubr.msk.bf16.vlgmr.msra.gmra.mrb[44].mxu0 %vm223_vm2, %v5513_v17  ;;  %v1905_v29 = vpop.permute.xlu1 %1904 }
  0xe9   : > { %1745 = vmatpush1.bf16.msra.mxu0 %v1730_v23  ;;  %3656 = vrot.lane.b32.xlu0 %v6327_v26, %s5949_s27  ;;  %v1915_v38 = vsel %vm1914_vm11, %v1903_v24, %v1905_v29 }
  0xea   : > { %1776 = vmatprep.mubr.bf16.mxu0 %v5929_v6  ;;  %5763 = vmatprep.subr.bf16.mxu0 %v5941_v25  ;;  %v1907_v31 = vpop.permute.xlu0 %1906  ;;  %v1924_v41 = vsel %vm227_vm1, %v1915_v38, 0  ;;  %v5548_v38 = vld [vmem:[%s6792_s0 + $0x30] sm:$0xf] }
  0xeb   : > { %3658 = vrot.lane.b32.xlu1 %v6334_v28, %s5949_s27  ;;  %v1916_v33 = vsel %vm1914_vm11, %v1905_v29, %v1907_v31 }
  0xec   : > { %5760 = vmatmul.mubr.msk.bf16.vlgmr.msra.gmra.mrb[44].mxu1 %vm223_vm2, %v5513_v17  ;;  %v1909_v34 = vpop.permute.xlu1 %1908 }
  0xed   : > { %1786 = vmatpush1.bf16.msra.mxu1 %v1736_v30  ;;  %3842 = vrot.lane.b32.xlu0 %v6286_v10, %s5950_s29  ;;  %v1917_v43 = vsel %vm1914_vm11, %v1907_v31, %v1909_v34 }
  0xee   : > { %1817 = vmatprep.mubr.bf16.mxu1 %v5929_v6  ;;  %5529 = vmatprep.subr.msk.bf16.mxu1 %vm227_vm1, %v1916_v33  ;;  %v1911_v37 = vpop.permute.xlu0 %1910  ;;  %v1930_v45 = vsel %vm227_vm1, %v1917_v43, 0 }
  0xef   : > { %3844 = vrot.lane.b32.xlu1 %v6297_v13, %s5950_s29  ;;  %v1918_v39 = vsel %vm1914_vm11, %v1909_v34, %v1911_v37 }
  0xf0   : > { %5523 = vmatmul.mubr.msk.bf16.vlgmr.msra.gmra.mrb[48].mxu0 %vm223_vm2, %v5520_v35  ;;  %v1913_v40 = vpop.permute.xlu1 %1912 }
  0xf1   : > { %5764 = vmatpush3.bf16.msra.mxu0 %v1742_v36  ;;  %3846 = vrot.lane.b32.xlu0 %v6306_v14, %s5950_s29  ;;  %v1919_v47 = vsel %vm1914_vm11, %v1911_v37, %v1913_v40  ;;  %vm4436_vm11 = vcmask 367616  }
  0xf2   : > { %5765 = vmatprep.mubr.msk.bf16.mxu0 %vm5942_vm3, %v5941_v25  ;;  %5531 = vmatprep.subr.msk.bf16.mxu0 %vm227_vm1, %v1918_v39  ;;  %v2097_v42 = vpop.permute.xlu0 %2096  ;;  %v1936_v51 = vsel %vm227_vm1, %v1919_v47, 0 }
  0xf3   : > { %3848 = vrot.lane.b32.xlu1 %v6317_v22, %s5950_s29 }
  0xf4   : > { %5525 = vmatmul.mubr.msk.bf16.vlgmr.msra.gmra.mrb[48].mxu1 %vm223_vm2, %v5520_v35  ;;  %v2099_v44 = vpop.permute.xlu1 %2098 }
  0xf5   : > { %1939 = vmatpush1.bf16.msra.mxu1 %v1924_v41  ;;  %3850 = vrot.lane.b32.xlu0 %v6327_v26, %s5950_s29  ;;  %v2109_v53 = vsel %vm2108_vm12, %v2097_v42, %v2099_v44 }
  0xf6   : > { %1970 = vmatprep.mubr.bf16.mxu1 %v5929_v6  ;;  %5769 = vmatprep.subr.bf16.mxu1 %v5941_v25  ;;  %v2101_v46 = vpop.permute.xlu0 %2100  ;;  %v2118_v56 = vsel %vm227_vm1, %v2109_v53, 0  ;;  %v5555_v53 = vld [vmem:[%s6792_s0 + $0x34] sm:$0xf] }
  0xf7   : > { %3852 = vrot.lane.b32.xlu1 %v6334_v28, %s5950_s29  ;;  %v2110_v48 = vsel %vm2108_vm12, %v2099_v44, %v2101_v46 }
  0xf8   : > { %5766 = vmatmul.mubr.msk.bf16.vlgmr.msra.gmra.mrb[52].mxu0 %vm223_vm2, %v5520_v35  ;;  %v2103_v49 = vpop.permute.xlu1 %2102 }
  0xf9   : > { %1980 = vmatpush1.bf16.msra.mxu0 %v1930_v45  ;;  %4036 = vrot.lane.b32.xlu0 %v6286_v10, %s5951_s5  ;;  %v2111_v58 = vsel %vm2108_vm12, %v2101_v46, %v2103_v49 }
  0xfa   : > { %2011 = vmatprep.mubr.bf16.mxu0 %v5929_v6  ;;  %5536 = vmatprep.subr.msk.bf16.mxu0 %vm227_vm1, %v2110_v48  ;;  %v2105_v52 = vpop.permute.xlu0 %2104  ;;  %v2124_v60 = vsel %vm227_vm1, %v2111_v58, 0 }
  0xfb   : > { %4038 = vrot.lane.b32.xlu1 %v6297_v13, %s5951_s5  ;;  %v2112_v54 = vsel %vm2108_vm12, %v2103_v49, %v2105_v52 }
  0xfc   : > { %5530 = vmatmul.mubr.msk.bf16.vlgmr.msra.gmra.mrb[52].mxu1 %vm223_vm2, %v5527_v50  ;;  %v2107_v55 = vpop.permute.xlu1 %2106 }
  0xfd   : > { %5770 = vmatpush3.bf16.msra.mxu1 %v1936_v51  ;;  %4040 = vrot.lane.b32.xlu0 %v6306_v14, %s5951_s5  ;;  %v2113_v61 = vsel %vm2108_vm12, %v2105_v52, %v2107_v55  ;;  %vm4630_vm12 = vcmask 359424  }
  0xfe   : > { %5771 = vmatprep.mubr.msk.bf16.mxu1 %vm5942_vm3, %v5941_v25  ;;  %5538 = vmatprep.subr.msk.bf16.mxu1 %vm227_vm1, %v2112_v54  ;;  %v2291_v57 = vpop.permute.xlu0 %2290  ;;  %v2130_v1 = vsel %vm227_vm1, %v2113_v61, 0 }
  0xff   : > { %4042 = vrot.lane.b32.xlu1 %v6317_v22, %s5951_s5 }
 0x100   : > { %5532 = vmatmul.mubr.msk.bf16.vlgmr.msra.gmra.mrb[56].mxu0 %vm223_vm2, %v5527_v50  ;;  %v2293_v59 = vpop.permute.xlu1 %2292 }
 0x101   : > { %2133 = vmatpush1.bf16.msra.mxu0 %v2118_v56  ;;  %4044 = vrot.lane.b32.xlu0 %v6327_v26, %s5951_s5  ;;  %v2303_v2 = vsel %vm2302_vm13, %v2291_v57, %v2293_v59 }
 0x102   : > { %2164 = vmatprep.mubr.bf16.mxu0 %v5929_v6  ;;  %5775 = vmatprep.subr.bf16.mxu0 %v5941_v25  ;;  %v2312_v7 = vsel %vm227_vm1, %v2303_v2, 0 }
 0x103   : > { %v2295_v62 = vpop.permute.xlu0 %2294  ;;  %4046 = vrot.lane.b32.xlu1 %v6334_v28, %s5951_s5 }
 0x104   : > { %5772 = vmatmul.mubr.msk.bf16.vlgmr.msra.gmra.mrb[56].mxu1 %vm223_vm2, %v5527_v50  ;;  %v2304_v63 = vsel %vm2302_vm13, %v2293_v59, %v2295_v62 }
 0x105   : > { %2174 = vmatpush1.bf16.msra.mxu1 %v2124_v60  ;;  %4230 = vrot.lane.b32.xlu0 %v6286_v10, %s5952_s8  ;;  %v2297_v8 = vpop.permute.xlu1 %2296 }
 0x106   : > { %2205 = vmatprep.mubr.bf16.mxu1 %v5929_v6  ;;  %5543 = vmatprep.subr.msk.bf16.mxu1 %vm227_vm1, %v2304_v63  ;;  %v2305_v9 = vsel %vm2302_vm13, %v2295_v62, %v2297_v8 }
 0x107   : > { %v2299_v11 = vpop.permute.xlu0 %2298  ;;  %4232 = vrot.lane.b32.xlu1 %v6297_v13, %s5952_s8  ;;  %v2318_v16 = vsel %vm227_vm1, %v2305_v9, 0 }
 0x108   : > { %5537 = vmatmul.mubr.msk.bf16.vlgmr.msra.gmra.mrb[60].mxu0 %vm223_vm2, %v5534_v0  ;;  %v2306_v3 = vsel %vm2302_vm13, %v2297_v8, %v2299_v11 }
 0x109   : > { %5776 = vmatpush3.bf16.msra.mxu0 %v2130_v1  ;;  %4234 = vrot.lane.b32.xlu0 %v6306_v14, %s5952_s8  ;;  %v2301_v4 = vpop.permute.xlu1 %2300 }
 0x10a   : > { %5777 = vmatprep.mubr.msk.bf16.mxu0 %vm5942_vm3, %v5941_v25  ;;  %5545 = vmatprep.subr.msk.bf16.mxu0 %vm227_vm1, %v2306_v3  ;;  %v2307_v17 = vsel %vm2302_vm13, %v2299_v11, %v2301_v4  ;;  %v5562_v11 = vld [vmem:[%s6792_s0 + $0x38] sm:$0xf]  ;;  %vm4824_vm13 = vcmask 293888  }
 0x10b   : > { %v2485_v12 = vpop.permute.xlu0 %2484  ;;  %4236 = vrot.lane.b32.xlu1 %v6317_v22, %s5952_s8  ;;  %v2324_v5 = vsel %vm227_vm1, %v2307_v17, 0 }
 0x10c   : > { %5539 = vmatmul.mubr.msk.bf16.vlgmr.msra.gmra.mrb[60].mxu1 %vm223_vm2, %v5534_v0 }
 0x10d   : > { %2327 = vmatpush1.bf16.msra.mxu1 %v2312_v7  ;;  %4238 = vrot.lane.b32.xlu0 %v6327_v26, %s5952_s8  ;;  %v2487_v15 = vpop.permute.xlu1 %2486 }
 0x10e   : > { %2358 = vmatprep.mubr.bf16.mxu1 %v5929_v6  ;;  %5781 = vmatprep.subr.bf16.mxu1 %v5941_v25  ;;  %v2497_v23 = vsel %vm2496_vm14, %v2485_v12, %v2487_v15 }
 0x10f   : > { %v2489_v18 = vpop.permute.xlu0 %2488  ;;  %4240 = vrot.lane.b32.xlu1 %v6334_v28, %s5952_s8  ;;  %v2506_v30 = vsel %vm227_vm1, %v2497_v23, 0 }
 0x110   : > { %5778 = vmatmul.mubr.msk.bf16.vlgmr.msra.gmra.mrb[64].mxu0 %vm223_vm2, %v5534_v0  ;;  %v2498_v19 = vsel %vm2496_vm14, %v2487_v15, %v2489_v18 }
 0x111   : > { %2368 = vmatpush1.bf16.msra.mxu0 %v2318_v16  ;;  %4424 = vrot.lane.b32.xlu0 %v6286_v10, %s5953_s11  ;;  %v2491_v21 = vpop.permute.xlu1 %2490 }
 0x112   : > { %2399 = vmatprep.mubr.bf16.mxu0 %v5929_v6  ;;  %5550 = vmatprep.subr.msk.bf16.mxu0 %vm227_vm1, %v2498_v19  ;;  %v2499_v31 = vsel %vm2496_vm14, %v2489_v18, %v2491_v21 }
 0x113   : > { %v2493_v24 = vpop.permute.xlu0 %2492  ;;  %4426 = vrot.lane.b32.xlu1 %v6297_v13, %s5953_s11  ;;  %v2512_v34 = vsel %vm227_vm1, %v2499_v31, 0 }
 0x114   : > { %5544 = vmatmul.mubr.msk.bf16.vlgmr.msra.gmra.mrb[64].mxu1 %vm223_vm2, %v5541_v20  ;;  %v2500_v27 = vsel %vm2496_vm14, %v2491_v21, %v2493_v24 }
 0x115   : > { %5782 = vmatpush3.bf16.msra.mxu1 %v2324_v5  ;;  %4428 = vrot.lane.b32.xlu0 %v6306_v14, %s5953_s11  ;;  %v2495_v29 = vpop.permute.xlu1 %2494 }
 0x116   : > { %5783 = vmatprep.mubr.msk.bf16.mxu1 %vm5942_vm3, %v5941_v25  ;;  %5552 = vmatprep.subr.msk.bf16.mxu1 %vm227_vm1, %v2500_v27  ;;  %v2501_v35 = vsel %vm2496_vm14, %v2493_v24, %v2495_v29  ;;  %v5569_v24 = vld [vmem:[%s6792_s0 + $0x3c] sm:$0xf]  ;;  %vm5018_vm14 = vcmask 285696  }
 0x117   : > { %v2679_v32 = vpop.permute.xlu0 %2678  ;;  %4430 = vrot.lane.b32.xlu1 %v6317_v22, %s5953_s11  ;;  %v2518_v40 = vsel %vm227_vm1, %v2501_v35, 0 }
 0x118   : > { %5546 = vmatmul.mubr.msk.bf16.vlgmr.msra.gmra.mrb[68].mxu0 %vm223_vm2, %v5541_v20 }
 0x119   : > { %2521 = vmatpush1.bf16.msra.mxu0 %v2506_v30  ;;  %4432 = vrot.lane.b32.xlu0 %v6327_v26, %s5953_s11  ;;  %v2681_v33 = vpop.permute.xlu1 %2680 }
 0x11a   : > { %2552 = vmatprep.mubr.bf16.mxu0 %v5929_v6  ;;  %5787 = vmatprep.subr.bf16.mxu0 %v5941_v25  ;;  %v2691_v41 = vsel %vm2690_vm15, %v2679_v32, %v2681_v33 }
 0x11b   : > { %v2683_v36 = vpop.permute.xlu0 %2682  ;;  %4434 = vrot.lane.b32.xlu1 %v6334_v28, %s5953_s11  ;;  %v2700_v45 = vsel %vm227_vm1, %v2691_v41, 0 }
 0x11c   : > { %5784 = vmatmul.mubr.msk.bf16.vlgmr.msra.gmra.mrb[68].mxu1 %vm223_vm2, %v5541_v20  ;;  %v2692_v37 = vsel %vm2690_vm15, %v2681_v33, %v2683_v36 }
 0x11d   : > { %2562 = vmatpush1.bf16.msra.mxu1 %v2512_v34  ;;  %4618 = vrot.lane.b32.xlu0 %v6286_v10, %s5954_s16  ;;  %v2685_v39 = vpop.permute.xlu1 %2684 }
 0x11e   : > { %2593 = vmatprep.mubr.bf16.mxu1 %v5929_v6  ;;  %5557 = vmatprep.subr.msk.bf16.mxu1 %vm227_vm1, %v2692_v37  ;;  %v2693_v46 = vsel %vm2690_vm15, %v2683_v36, %v2685_v39 }
 0x11f   : > { %v2687_v42 = vpop.permute.xlu0 %2686  ;;  %4620 = vrot.lane.b32.xlu1 %v6297_v13, %s5954_s16  ;;  %v2706_v49 = vsel %vm227_vm1, %v2693_v46, 0 }
 0x120   : > { %5551 = vmatmul.mubr.msk.bf16.vlgmr.msra.gmra.mrb[72].mxu0 %vm223_vm2, %v5548_v38  ;;  %v2694_v43 = vsel %vm2690_vm15, %v2685_v39, %v2687_v42 }
 0x121   : > { %5788 = vmatpush3.bf16.msra.mxu0 %v2518_v40  ;;  %4622 = vrot.lane.b32.xlu0 %v6306_v14, %s5954_s16  ;;  %v2689_v44 = vpop.permute.xlu1 %2688 }
 0x122   : > { %5789 = vmatprep.mubr.msk.bf16.mxu0 %vm5942_vm3, %v5941_v25  ;;  %5559 = vmatprep.subr.msk.bf16.mxu0 %vm227_vm1, %v2694_v43  ;;  %v2695_v50 = vsel %vm2690_vm15, %v2687_v42, %v2689_v44  ;;  %vm5212_vm15 = vcmask 277504  }
 0x123   : > { %v2873_v47 = vpop.permute.xlu0 %2872  ;;  %4624 = vrot.lane.b32.xlu1 %v6317_v22, %s5954_s16  ;;  %v2712_v55 = vsel %vm227_vm1, %v2695_v50, 0 }
 0x124   : > { %5553 = vmatmul.mubr.msk.bf16.vlgmr.msra.gmra.mrb[72].mxu1 %vm223_vm2, %v5548_v38 }
 0x125   : > { %2715 = vmatpush1.bf16.msra.mxu1 %v2700_v45  ;;  %4626 = vrot.lane.b32.xlu0 %v6327_v26, %s5954_s16  ;;  %v2875_v48 = vpop.permute.xlu1 %2874 }
 0x126   : > { %2746 = vmatprep.mubr.bf16.mxu1 %v5929_v6  ;;  %5793 = vmatprep.subr.bf16.mxu1 %v5941_v25  ;;  %v2885_v56 = vsel %vm2884_vm0, %v2873_v47, %v2875_v48 }
 0x127   : > { %v2877_v51 = vpop.permute.xlu0 %2876  ;;  %4628 = vrot.lane.b32.xlu1 %v6334_v28, %s5954_s16  ;;  %v2894_v60 = vsel %vm227_vm1, %v2885_v56, 0 }
 0x128   : > { %5790 = vmatmul.mubr.msk.bf16.vlgmr.msra.gmra.mrb[76].mxu0 %vm223_vm2, %v5548_v38  ;;  %v2886_v52 = vsel %vm2884_vm0, %v2875_v48, %v2877_v51 }
 0x129   : > { %2756 = vmatpush1.bf16.msra.mxu0 %v2706_v49  ;;  %4812 = vrot.lane.b32.xlu0 %v6286_v10, %s5955_s20  ;;  %v2879_v54 = vpop.permute.xlu1 %2878 }
 0x12a   : > { %2787 = vmatprep.mubr.bf16.mxu0 %v5929_v6  ;;  %5564 = vmatprep.subr.msk.bf16.mxu0 %vm227_vm1, %v2886_v52  ;;  %v2887_v61 = vsel %vm2884_vm0, %v2877_v51, %v2879_v54  ;;  %v5583_v51 = vld [vmem:[%s6792_s0 + $0x44] sm:$0xf] }
 0x12b   : > { %v2881_v57 = vpop.permute.xlu0 %2880  ;;  %4814 = vrot.lane.b32.xlu1 %v6297_v13, %s5955_s20  ;;  %v2900_v0 = vsel %vm227_vm1, %v2887_v61, 0 }
 0x12c   : > { %5558 = vmatmul.mubr.msk.bf16.vlgmr.msra.gmra.mrb[76].mxu1 %vm223_vm2, %v5555_v53  ;;  %v2888_v58 = vsel %vm2884_vm0, %v2879_v54, %v2881_v57 }
 0x12d   : > { %5794 = vmatpush3.bf16.msra.mxu1 %v2712_v55  ;;  %4816 = vrot.lane.b32.xlu0 %v6306_v14, %s5955_s20  ;;  %v2883_v59 = vpop.permute.xlu1 %2882 }
 0x12e   : > { %5795 = vmatprep.mubr.msk.bf16.mxu1 %vm5942_vm3, %v5941_v25  ;;  %5566 = vmatprep.subr.msk.bf16.mxu1 %vm227_vm1, %v2888_v58  ;;  %v2889_v8 = vsel %vm2884_vm0, %v2881_v57, %v2883_v59 }
 0x12f   : > { %v3067_v62 = vpop.permute.xlu0 %3066  ;;  %4818 = vrot.lane.b32.xlu1 %v6317_v22, %s5955_s20  ;;  %v2906_v4 = vsel %vm227_vm1, %v2889_v8, 0 }
 0x130   : > { %5560 = vmatmul.mubr.msk.bf16.vlgmr.msra.gmra.mrb[80].mxu0 %vm223_vm2, %v5555_v53 }
 0x131   : > { %2909 = vmatpush1.bf16.msra.mxu0 %v2894_v60  ;;  %4820 = vrot.lane.b32.xlu0 %v6327_v26, %s5955_s20  ;;  %v3069_v63 = vpop.permute.xlu1 %3068 }
 0x132   : > { %2940 = vmatprep.mubr.bf16.mxu0 %v5929_v6  ;;  %5799 = vmatprep.subr.bf16.mxu0 %v5941_v25  ;;  %v3079_v7 = vsel %vm3078_vm4, %v3067_v62, %v3069_v63 }
 0x133   : > { %v3071_v1 = vpop.permute.xlu0 %3070  ;;  %4822 = vrot.lane.b32.xlu1 %v6334_v28, %s5955_s20  ;;  %v3088_v16 = vsel %vm227_vm1, %v3079_v7, 0 }
 0x134   : > { %5796 = vmatmul.mubr.msk.bf16.vlgmr.msra.gmra.mrb[80].mxu1 %vm223_vm2, %v5555_v53  ;;  %v3080_v2 = vsel %vm3078_vm4, %v3069_v63, %v3071_v1 }
 0x135   : > { %2950 = vmatpush1.bf16.msra.mxu1 %v2900_v0  ;;  %5006 = vrot.lane.b32.xlu0 %v6286_v10, %s5956_s23  ;;  %v3073_v3 = vpop.permute.xlu1 %3072 }
 0x136   : > { %2981 = vmatprep.mubr.bf16.mxu1 %v5929_v6  ;;  %5571 = vmatprep.subr.msk.bf16.mxu1 %vm227_vm1, %v3080_v2  ;;  %v3081_v17 = vsel %vm3078_vm4, %v3071_v1, %v3073_v3 }
 0x137   : > { %v3075_v9 = vpop.permute.xlu0 %3074  ;;  %5008 = vrot.lane.b32.xlu1 %v6297_v13, %s5956_s23  ;;  %v3094_v20 = vsel %vm227_vm1, %v3081_v17, 0 }
 0x138   : > { %5565 = vmatmul.mubr.msk.bf16.vlgmr.msra.gmra.mrb[84].mxu0 %vm223_vm2, %v5562_v11  ;;  %v3082_v12 = vsel %vm3078_vm4, %v3073_v3, %v3075_v9  ;;  %v5590_v3 = vld [vmem:[%s6792_s0 + $0x48] sm:$0xf] }
 0x139   : > { %5800 = vmatpush3.bf16.msra.mxu0 %v2906_v4  ;;  %5010 = vrot.lane.b32.xlu0 %v6306_v14, %s5956_s23  ;;  %v3077_v15 = vpop.permute.xlu1 %3076 }
 0x13a   : > { %5801 = vmatprep.mubr.msk.bf16.mxu0 %vm5942_vm3, %v5941_v25  ;;  %5573 = vmatprep.subr.msk.bf16.mxu0 %vm227_vm1, %v3082_v12  ;;  %v3083_v21 = vsel %vm3078_vm4, %v3075_v9, %v3077_v15 }
 0x13b   : > { %v3261_v18 = vpop.permute.xlu0 %3260  ;;  %5012 = vrot.lane.b32.xlu1 %v6317_v22, %s5956_s23  ;;  %v3100_v29 = vsel %vm227_vm1, %v3083_v21, 0 }
 0x13c   : > { %5567 = vmatmul.mubr.msk.bf16.vlgmr.msra.gmra.mrb[84].mxu1 %vm223_vm2, %v5562_v11 }
 0x13d   : > { %3103 = vmatpush1.bf16.msra.mxu1 %v3088_v16  ;;  %5014 = vrot.lane.b32.xlu0 %v6327_v26, %s5956_s23  ;;  %v3263_v19 = vpop.permute.xlu1 %3262 }
 0x13e   : > { %3134 = vmatprep.mubr.bf16.mxu1 %v5929_v6  ;;  %5805 = vmatprep.subr.bf16.mxu1 %v5941_v25  ;;  %v3273_v30 = vsel %vm3272_vm5, %v3261_v18, %v3263_v19 }
 0x13f   : > { %v3265_v5 = vpop.permute.xlu0 %3264  ;;  %5016 = vrot.lane.b32.xlu1 %v6334_v28, %s5956_s23  ;;  %v3282_v33 = vsel %vm227_vm1, %v3273_v30, 0 }
 0x140   : > { %5802 = vmatmul.mubr.msk.bf16.vlgmr.msra.gmra.mrb[88].mxu0 %vm223_vm2, %v5562_v11  ;;  %v3274_v23 = vsel %vm3272_vm5, %v3263_v19, %v3265_v5 }
 0x141   : > { %3144 = vmatpush1.bf16.msra.mxu0 %v3094_v20  ;;  %5200 = vrot.lane.b32.xlu0 %v6286_v10, %s5957_s26  ;;  %v3267_v27 = vpop.permute.xlu1 %3266 }
 0x142   : > { %3175 = vmatprep.mubr.bf16.mxu0 %v5929_v6  ;;  %5578 = vmatprep.subr.msk.bf16.mxu0 %vm227_vm1, %v3274_v23  ;;  %v3275_v34 = vsel %vm3272_vm5, %v3265_v5, %v3267_v27 }
 0x143   : > { %v3269_v31 = vpop.permute.xlu0 %3268  ;;  %5202 = vrot.lane.b32.xlu1 %v6297_v13, %s5957_s26 }
 0x144   : > { %5572 = vmatmul.mubr.msk.bf16.vlgmr.msra.gmra.mrb[88].mxu1 %vm223_vm2, %v5569_v24  ;;  %v3276_v32 = vsel %vm3272_vm5, %v3267_v27, %v3269_v31 }
 0x145   : > { %5806 = vmatpush3.bf16.msra.mxu1 %v3100_v29  ;;  %5204 = vrot.lane.b32.xlu0 %v6306_v14, %s5957_s26  ;;  %v3271_v10 = vpop.permute.xlu1 %3270  ;;  %v3288_v14 = vsel %vm227_vm1, %v3275_v34, 0 }
 0x146   : > { %5807 = vmatprep.mubr.msk.bf16.mxu1 %vm5942_vm3, %v5941_v25  ;;  %5580 = vmatprep.subr.msk.bf16.mxu1 %vm227_vm1, %v3276_v32  ;;  %v3277_v36 = vsel %vm3272_vm5, %v3269_v31, %v3271_v10 }
 0x147   : > { %v3455_v35 = vpop.permute.xlu0 %3454  ;;  %5206 = vrot.lane.b32.xlu1 %v6317_v22, %s5957_s26  ;;  %v3294_v39 = vsel %vm227_vm1, %v3277_v36, 0 }
 0x148   : > { %5574 = vmatmul.mubr.msk.bf16.vlgmr.msra.gmra.mrb[92].mxu0 %vm223_vm2, %v5569_v24 }
 0x149   : > { %3297 = vmatpush1.bf16.msra.mxu0 %v3282_v33  ;;  %5208 = vrot.lane.b32.xlu0 %v6327_v26, %s5957_s26  ;;  %v3457_v13 = vpop.permute.xlu1 %3456  ;;  %v5576_v26 = vld [vmem:[%s6792_s0 + $0x40] sm:$0xf] }
 0x14a   : > { %3328 = vmatprep.mubr.bf16.mxu0 %v5929_v6  ;;  %5811 = vmatprep.subr.bf16.mxu0 %v5941_v25  ;;  %v3467_v40 = vsel %vm3466_vm6, %v3455_v35, %v3457_v13 }
 0x14b   : > { %v3459_v37 = vpop.permute.xlu0 %3458  ;;  %5210 = vrot.lane.b32.xlu1 %v6334_v28, %s5957_s26  ;;  %v3476_v43 = vsel %vm227_vm1, %v3467_v40, 0  ;;  %s5878_s26 = smul.u32 20, %s6797_s13 }
 0x14c   : > { %5808 = vmatmul.mubr.msk.bf16.vlgmr.msra.gmra.mrb[92].mxu1 %vm223_vm2, %v5569_v24  ;;  %v3468_v22 = vsel %vm3466_vm6, %v3457_v13, %v3459_v37 }
 0x14d   : > { %3338 = vmatpush1.bf16.msra.mxu1 %v3288_v14  ;;  %3369 = vmatprep.mubr.bf16.mxu1 %v5929_v6  ;;  %v3461_v38 = vpop.permute.xlu1 %3460  ;;  %s170_s28 = scalar_lea.vmem %s6795_s3, %s5878_s26 }
 0x14e   : > { %5585 = vmatprep.subr.msk.bf16.mxu1 %vm227_vm1, %v3468_v22  ;;  %v3469_v44 = vsel %vm3466_vm6, %v3459_v37, %v3461_v38 }
 0x14f   : > { %v3463_v41 = vpop.permute.xlu0 %3462  ;;  %v3482_v47 = vsel %vm227_vm1, %v3469_v44, 0 }
 0x150   : > { %5579 = vmatmul.mubr.msk.bf16.vlgmr.msra.gmra.mrb[96].mxu0 %vm223_vm2, %v5576_v26  ;;  %v3470_v28 = vsel %vm3466_vm6, %v3461_v38, %v3463_v41 }
 0x151   : > { %5812 = vmatpush3.bf16.msra.mxu0 %v3294_v39  ;;  %5813 = vmatprep.mubr.msk.bf16.mxu0 %vm5942_vm3, %v5941_v25  ;;  %v3465_v42 = vpop.permute.xlu1 %3464 }
 0x152   : > { %5587 = vmatprep.subr.msk.bf16.mxu0 %vm227_vm1, %v3470_v28  ;;  %v3471_v48 = vsel %vm3466_vm6, %v3463_v41, %v3465_v42 }
 0x153   : > { %v3649_v45 = vpop.permute.xlu0 %3648  ;;  %v3488_v53 = vsel %vm227_vm1, %v3471_v48, 0 }
 0x154   : > { %5581 = vmatmul.mubr.msk.bf16.vlgmr.msra.gmra.mrb[96].mxu1 %vm223_vm2, %v5576_v26 }
 0x155   : > { %3491 = vmatpush1.bf16.msra.mxu1 %v3476_v43  ;;  %3522 = vmatprep.mubr.bf16.mxu1 %v5929_v6  ;;  %v3651_v46 = vpop.permute.xlu1 %3650 }
 0x156   : > { %5817 = vmatprep.subr.bf16.mxu1 %v5941_v25  ;;  %v3661_v54 = vsel %vm3660_vm7, %v3649_v45, %v3651_v46 }
 0x157   : > { %v3653_v49 = vpop.permute.xlu0 %3652  ;;  %v3670_v58 = vsel %vm227_vm1, %v3661_v54, 0 }
 0x158   : > { %5814 = vmatmul.mubr.msk.bf16.vlgmr.msra.gmra.mrb[100].mxu0 %vm223_vm2, %v5576_v26  ;;  %v3662_v50 = vsel %vm3660_vm7, %v3651_v46, %v3653_v49  ;;  %v5597_v26 = vld [vmem:[%s6792_s0 + $0x4c] sm:$0xf] }
 0x159   : > { %3532 = vmatpush1.bf16.msra.mxu0 %v3482_v47  ;;  %3563 = vmatprep.mubr.bf16.mxu0 %v5929_v6  ;;  %v3655_v52 = vpop.permute.xlu1 %3654 }
 0x15a   : > { %5592 = vmatprep.subr.msk.bf16.mxu0 %vm227_vm1, %v3662_v50  ;;  %v3663_v59 = vsel %vm3660_vm7, %v3653_v49, %v3655_v52 }
 0x15b   : > { %v3657_v55 = vpop.permute.xlu0 %3656  ;;  %v3676_v62 = vsel %vm227_vm1, %v3663_v59, 0 }
 0x15c   : > { %5586 = vmatmul.mubr.msk.bf16.vlgmr.msra.gmra.mrb[100].mxu1 %vm223_vm2, %v5583_v51  ;;  %v3664_v56 = vsel %vm3660_vm7, %v3655_v52, %v3657_v55 }
 0x15d   : > { %5818 = vmatpush3.bf16.msra.mxu1 %v3488_v53  ;;  %5819 = vmatprep.mubr.msk.bf16.mxu1 %vm5942_vm3, %v5941_v25  ;;  %v3659_v57 = vpop.permute.xlu1 %3658 }
 0x15e   : > { %5594 = vmatprep.subr.msk.bf16.mxu1 %vm227_vm1, %v3664_v56  ;;  %v3665_v0 = vsel %vm3660_vm7, %v3657_v55, %v3659_v57 }
 0x15f   : > { %v3843_v60 = vpop.permute.xlu0 %3842  ;;  %v3682_v7 = vsel %vm227_vm1, %v3665_v0, 0 }
 0x160   : > { %5588 = vmatmul.mubr.msk.bf16.vlgmr.msra.gmra.mrb[104].mxu0 %vm223_vm2, %v5583_v51 }
 0x161   : > { %3685 = vmatpush1.bf16.msra.mxu0 %v3670_v58  ;;  %3716 = vmatprep.mubr.bf16.mxu0 %v5929_v6  ;;  %v3845_v61 = vpop.permute.xlu1 %3844 }
 0x162   : > { %5823 = vmatprep.subr.bf16.mxu0 %v5941_v25  ;;  %v3855_v12 = vsel %vm3854_vm8, %v3843_v60, %v3845_v61 }
 0x163   : > { %v277_v63 = vpop.f32.mrb[0].mxu0  ;;  %v3847_v8 = vpop.permute.xlu0 %3846  ;;  %v3864_v21 = vsel %vm227_vm1, %v3855_v12, 0 }
 0x164   : > { %v279_v1 = vpop.f32.mrb[1].mxu0  ;;  %5820 = vmatmul.mubr.msk.bf16.vlgmr.msra.gmra.mrb[104].mxu1 %vm223_vm2, %v5583_v51  ;;  %v3856_v2 = vsel %vm3854_vm8, %v3845_v61, %v3847_v8 }
 0x165   : > { %3726 = vmatpush1.bf16.msra.mxu1 %v3676_v62  ;;  %v281_v11 = vpop.f32.mrb[2].mxu0  ;;  %3757 = vmatprep.mubr.bf16.mxu1 %v5929_v6  ;;  %v3849_v4 = vpop.permute.xlu1 %3848 }
 0x166   : > { %v282_v9 = vpop.f32.mrb[3].mxu0  ;;  %5599 = vmatprep.subr.msk.bf16.mxu1 %vm227_vm1, %v3856_v2  ;;  %v3857_v24 = vsel %vm3854_vm8, %v3847_v8, %v3849_v4  ;;  %v5604_v11 = vld [vmem:[%s6792_s0 + $0x50] sm:$0xf] }
 0x167   : > { %v318_v15 = vpop.f32.mrb[0].mxu1  ;;  %v3851_v16 = vpop.permute.xlu0 %3850  ;;  %v3870_v32 = vsel %vm227_vm1, %v3857_v24, 0 }
 0x168   : > { %5593 = vmatmul.mubr.msk.bf16.vlgmr.msra.gmra.mrb[108].mxu0 %vm223_vm2, %v5590_v3  ;;  %v320_v17 = vpop.f32.mrb[1].mxu1  ;;  %v3858_v18 = vsel %vm3854_vm8, %v3849_v4, %v3851_v16 }
 0x169   : > { %5824 = vmatpush3.bf16.msra.mxu0 %v3682_v7  ;;  %v322_v19 = vpop.f32.mrb[2].mxu1  ;;  %5825 = vmatprep.mubr.msk.bf16.mxu0 %vm5942_vm3, %v5941_v25  ;;  %v3853_v20 = vpop.permute.xlu1 %3852 }
 0x16a   : > { %v323_v5 = vpop.f32.mrb[3].mxu1  ;;  %5601 = vmatprep.subr.msk.bf16.mxu0 %vm227_vm1, %v3858_v18  ;;  %v3859_v34 = vsel %vm3854_vm8, %v3851_v16, %v3853_v20 }
 0x16b   : > { %v359_v23 = vpop.f32.mrb[4].mxu0  ;;  %v4037_v27 = vpop.permute.xlu0 %4036  ;;  %v3876_v39 = vsel %vm227_vm1, %v3859_v34, 0 }
 0x16c   : > { %v5719_v29 = vpop.f32.mrb[5].mxu0  ;;  %5595 = vmatmul.mubr.msk.bf16.vlgmr.msra.gmra.mrb[108].mxu1 %vm223_vm2, %v5590_v3 }
 0x16d   : > { %3879 = vmatpush1.bf16.msra.mxu1 %v3864_v21  ;;  %v362_v30 = vpop.f32.mrb[6].mxu0  ;;  %3910 = vmatprep.mubr.bf16.mxu1 %v5929_v6  ;;  %v4039_v31 = vpop.permute.xlu1 %4038 }
 0x16e   : > { %v5720_v10 = vpop.f32.mrb[7].mxu0  ;;  %5829 = vmatprep.subr.bf16.mxu1 %v5941_v25  ;;  %v4049_v28 = vsel %vm4048_vm9, %v4037_v27, %v4039_v31 }
 0x16f   : > { %v425_v33 = vpop.f32.mrb[4].mxu1  ;;  %v4041_v35 = vpop.permute.xlu0 %4040  ;;  %v4058_v49 = vsel %vm227_vm1, %v4049_v28, 0 }
 0x170   : > { %v426_v13 = vadd.f32 %v425_v33, %v277_v63  ;;  %v427_v14 = vpop.f32.mrb[5].mxu1  ;;  %5826 = vmatmul.mubr.msk.bf16.vlgmr.msra.gmra.mrb[112].mxu0 %vm223_vm2, %v5590_v3  ;;  %v4050_v36 = vsel %vm4048_vm9, %v4039_v31, %v4041_v35 }
 0x171   : > { %v428_v37 = vadd.f32 %v427_v14, %v279_v1  ;;  %3920 = vmatpush1.bf16.msra.mxu0 %v3870_v32  ;;  %v429_v22 = vpop.f32.mrb[6].mxu1  ;;  %3951 = vmatprep.mubr.bf16.mxu0 %v5929_v6  ;;  %v4043_v38 = vpop.permute.xlu1 %4042 }
 0x172   : > { %v430_v40 = vpop.f32.mrb[7].mxu1  ;;  %5606 = vmatprep.subr.msk.bf16.mxu0 %vm227_vm1, %v4050_v36  ;;  %v4051_v52 = vsel %vm4048_vm9, %v4041_v35, %v4043_v38 }
 0x173   : > { %v466_v41 = vpop.f32.mrb[8].mxu0  ;;  %v4045_v42 = vpop.permute.xlu0 %4044  ;;  %v4064_v58 = vsel %vm227_vm1, %v4051_v52, 0 }
 0x174   : > { %v467_v43 = vadd.f32 %v466_v41, %v318_v15  ;;  %v468_v44 = vpop.f32.mrb[9].mxu0  ;;  %5600 = vmatmul.mubr.msk.bf16.vlgmr.msra.gmra.mrb[112].mxu1 %vm223_vm2, %v5597_v26  ;;  %v4052_v45 = vsel %vm4048_vm9, %v4043_v38, %v4045_v42 }
 0x175   : > { %v469_v46 = vadd.f32 %v468_v44, %v320_v17  ;;  %5830 = vmatpush3.bf16.msra.mxu1 %v3876_v39  ;;  %v470_v47 = vpop.f32.mrb[10].mxu0  ;;  %5831 = vmatprep.mubr.msk.bf16.mxu1 %vm5942_vm3, %v5941_v25  ;;  %v4047_v48 = vpop.permute.xlu1 %4046  ;;  %v5611_v39 = vld [vmem:[%s6792_s0 + $0x54] sm:$0xf] }
 0x176   : > { %v471_v50 = vpop.f32.mrb[11].mxu0  ;;  %5608 = vmatprep.subr.msk.bf16.mxu1 %vm227_vm1, %v4052_v45  ;;  %v4053_v61 = vsel %vm4048_vm9, %v4045_v42, %v4047_v48 }
 0x177   : > { %v507_v51 = vpop.f32.mrb[8].mxu1  ;;  %v4231_v53 = vpop.permute.xlu0 %4230  ;;  %v4070_v4 = vsel %vm227_vm1, %v4053_v61, 0 }
 0x178   : > { %v508_v54 = vadd.f32 %v507_v51, %v359_v23  ;;  %5602 = vmatmul.mubr.msk.bf16.vlgmr.msra.gmra.mrb[116].mxu0 %vm223_vm2, %v5597_v26  ;;  %v5725_v55 = vpop.f32.mrb[9].mxu1 }
 0x179   : > { %4073 = vmatpush1.bf16.msra.mxu0 %v4058_v49  ;;  %v510_v56 = vpop.f32.mrb[10].mxu1  ;;  %4104 = vmatprep.mubr.bf16.mxu0 %v5929_v6  ;;  %v4233_v57 = vpop.permute.xlu1 %4232 }
 0x17a   : > { %v5726_v59 = vpop.f32.mrb[11].mxu1  ;;  %5835 = vmatprep.subr.bf16.mxu0 %v5941_v25  ;;  %v4243_v12 = vsel %vm4242_vm10, %v4231_v53, %v4233_v57 }
 0x17b   : > { %v614_v60 = vpop.f32.mrb[12].mxu0  ;;  %v4235_v62 = vpop.permute.xlu0 %4234  ;;  %v4252_v5 = vsel %vm227_vm1, %v4243_v12, 0 }
 0x17c   : > { %v702_v63 = vadd.f32 %v614_v60, %v426_v13  ;;  %v616_v0 = vpop.f32.mrb[13].mxu0  ;;  %5832 = vmatmul.mubr.msk.bf16.vlgmr.msra.gmra.mrb[116].mxu1 %vm223_vm2, %v5597_v26  ;;  %v4244_v8 = vsel %vm4242_vm10, %v4233_v57, %v4235_v62 }
 0x17d   : > { %v703_v1 = vadd.f32 %v616_v0, %v428_v37  ;;  %4114 = vmatpush1.bf16.msra.mxu1 %v4064_v58  ;;  %v618_v2 = vpop.f32.mrb[14].mxu0  ;;  %4145 = vmatprep.mubr.bf16.mxu1 %v5929_v6  ;;  %v4237_v3 = vpop.permute.xlu1 %4236 }
 0x17e   : > { %v619_v7 = vpop.f32.mrb[15].mxu0  ;;  %5613 = vmatprep.subr.msk.bf16.mxu1 %vm227_vm1, %v4244_v8  ;;  %v4245_v27 = vsel %vm4242_vm10, %v4235_v62, %v4237_v3 }
 0x17f   : > { %v655_v9 = vpop.f32.mrb[12].mxu1  ;;  %v4239_v15 = vpop.permute.xlu0 %4238  ;;  %v4258_v33 = vsel %vm227_vm1, %v4245_v27, 0 }
 0x180   : > { %v704_v16 = vadd.f32 %v655_v9, %v467_v43  ;;  %v657_v17 = vpop.f32.mrb[13].mxu1  ;;  %5607 = vmatmul.mubr.msk.bf16.vlgmr.msra.gmra.mrb[120].mxu0 %vm223_vm2, %v5604_v11  ;;  %v4246_v18 = vsel %vm4242_vm10, %v4237_v3, %v4239_v15 }
 0x181   : > { %v705_v19 = vadd.f32 %v657_v17, %v469_v46  ;;  %5836 = vmatpush3.bf16.msra.mxu0 %v4070_v4  ;;  %v659_v20 = vpop.f32.mrb[14].mxu1  ;;  %5837 = vmatprep.mubr.msk.bf16.mxu0 %vm5942_vm3, %v5941_v25  ;;  %v4241_v21 = vpop.permute.xlu1 %4240  ;;  %v5618_v4 = vld [vmem:[%s6792_s0 + $0x58] sm:$0xf] }
 0x182   : > { %v660_v23 = vpop.f32.mrb[15].mxu1  ;;  %5615 = vmatprep.subr.msk.bf16.mxu0 %vm227_vm1, %v4246_v18  ;;  %v4247_v13 = vsel %vm4242_vm10, %v4239_v15, %v4241_v21 }
 0x183   : > { %v696_v24 = vpop.f32.mrb[16].mxu0  ;;  %v4425_v29 = vpop.permute.xlu0 %4424  ;;  %v4264_v41 = vsel %vm227_vm1, %v4247_v13, 0 }
 0x184   : > { %v706_v30 = vadd.f32 %v696_v24, %v508_v54  ;;  %v5731_v31 = vpop.f32.mrb[17].mxu0  ;;  %5609 = vmatmul.mubr.msk.bf16.vlgmr.msra.gmra.mrb[120].mxu1 %vm223_vm2, %v5604_v11 }
 0x185   : > { %4267 = vmatpush1.bf16.msra.mxu1 %v4252_v5  ;;  %v699_v32 = vpop.f32.mrb[18].mxu0  ;;  %4298 = vmatprep.mubr.bf16.mxu1 %v5929_v6  ;;  %v4427_v10 = vpop.permute.xlu1 %4426 }
 0x186   : > { %v5732_v34 = vpop.f32.mrb[19].mxu0  ;;  %5841 = vmatprep.subr.bf16.mxu1 %v5941_v25  ;;  %v4437_v43 = vsel %vm4436_vm11, %v4425_v29, %v4427_v10 }
 0x187   : > { %v808_v35 = vpop.f32.mrb[16].mxu1  ;;  %v4429_v14 = vpop.permute.xlu0 %4428  ;;  %v4446_v51 = vsel %vm227_vm1, %v4437_v43, 0 }
 0x188   : > { %v896_v36 = vadd.f32 %v808_v35, %v702_v63  ;;  %v810_v37 = vpop.f32.mrb[17].mxu1  ;;  %5838 = vmatmul.mubr.msk.bf16.vlgmr.msra.gmra.mrb[124].mxu0 %vm223_vm2, %v5604_v11  ;;  %v4438_v22 = vsel %vm4436_vm11, %v4427_v10, %v4429_v14  ;;  %v5363_v35 = vld [vmem:[%s6794_s2] sm:$0xff] }
 0x189   : > { %v897_v26 = vadd.f32 %v810_v37, %v703_v1  ;;  %4308 = vmatpush1.bf16.msra.mxu0 %v4258_v33  ;;  %v812_v38 = vpop.f32.mrb[18].mxu1  ;;  %4339 = vmatprep.mubr.bf16.mxu0 %v5929_v6  ;;  %v4431_v40 = vpop.permute.xlu1 %4430 }
 0x18a   : > { %v813_v28 = vpop.f32.mrb[19].mxu1  ;;  %5620 = vmatprep.subr.msk.bf16.mxu0 %vm227_vm1, %v4438_v22  ;;  %v4439_v54 = vsel %vm4436_vm11, %v4429_v14, %v4431_v40  ;;  %5366 = vperm.xlu0 %5917, %v5363_v35  }
 0x18b   : > { %v849_v42 = vpop.f32.mrb[20].mxu0  ;;  %v4433_v44 = vpop.permute.xlu0 %4432  ;;  %v4452_v60 = vsel %vm227_vm1, %v4439_v54, 0  ;;  %v5625_v28 = vld [vmem:[%s6792_s0 + $0x5c] sm:$0xf] }
 0x18c   : > { %v898_v45 = vadd.f32 %v849_v42, %v704_v16  ;;  %v851_v46 = vpop.f32.mrb[21].mxu0  ;;  %5614 = vmatmul.mubr.msk.bf16.vlgmr.msra.gmra.mrb[124].mxu1 %vm223_vm2, %v5611_v39  ;;  %v4440_v47 = vsel %vm4436_vm11, %v4431_v40, %v4433_v44 }
 0x18d   : > { %v899_v48 = vadd.f32 %v851_v46, %v705_v19  ;;  %5842 = vmatpush3.bf16.msra.mxu1 %v4264_v41  ;;  %v853_v49 = vpop.f32.mrb[22].mxu0  ;;  %5843 = vmatprep.mubr.msk.bf16.mxu1 %vm5942_vm3, %v5941_v25  ;;  %v4435_v50 = vpop.permute.xlu1 %4434 }
 0x18e   : > { %v854_v52 = vpop.f32.mrb[23].mxu0  ;;  %5622 = vmatprep.subr.msk.bf16.mxu1 %vm227_vm1, %v4440_v47  ;;  %v4441_v63 = vsel %vm4436_vm11, %v4433_v44, %v4435_v50 }
 0x18f   : > { %v890_v53 = vpop.f32.mrb[20].mxu1  ;;  %v4619_v55 = vpop.permute.xlu0 %4618  ;;  %v4458_v9 = vsel %vm227_vm1, %v4441_v63, 0 }
 0x190   : > { %v900_v56 = vadd.f32 %v890_v53, %v706_v30  ;;  %5616 = vmatmul.mubr.msk.bf16.vlgmr.msra.gmra.mrb[128].mxu0 %vm223_vm2, %v5611_v39  ;;  %v5737_v57 = vpop.f32.mrb[21].mxu1 }
 0x191   : > { %4461 = vmatpush1.bf16.msra.mxu0 %v4446_v51  ;;  %v893_v58 = vpop.f32.mrb[22].mxu1  ;;  %4492 = vmatprep.mubr.bf16.mxu0 %v5929_v6  ;;  %v4621_v59 = vpop.permute.xlu1 %4620 }
 0x192   : > { %v5738_v61 = vpop.f32.mrb[23].mxu1  ;;  %5847 = vmatprep.subr.bf16.mxu0 %v5941_v25  ;;  %v4631_v16 = vsel %vm4630_vm12, %v4619_v55, %v4621_v59 }
 0x193   : > { %v1002_v62 = vpop.f32.mrb[24].mxu0  ;;  %v4623_v0 = vpop.permute.xlu0 %4622  ;;  %v4640_v24 = vsel %vm227_vm1, %v4631_v16, 0 }
 0x194   : > { %v1090_v8 = vadd.f32 %v1002_v62, %v896_v36  ;;  %v1004_v1 = vpop.f32.mrb[25].mxu0  ;;  %5844 = vmatmul.mubr.msk.bf16.vlgmr.msra.gmra.mrb[128].mxu1 %vm223_vm2, %v5611_v39  ;;  %v4632_v2 = vsel %vm4630_vm12, %v4621_v59, %v4623_v0 }
 0x195   : > { %v1091_v11 = vadd.f32 %v1004_v1, %v897_v26  ;;  %4502 = vmatpush1.bf16.msra.mxu1 %v4452_v60  ;;  %v1006_v3 = vpop.f32.mrb[26].mxu0  ;;  %4533 = vmatprep.mubr.bf16.mxu1 %v5929_v6  ;;  %v4625_v7 = vpop.permute.xlu1 %4624 }
 0x196   : > { %v1007_v12 = vpop.f32.mrb[27].mxu0  ;;  %5627 = vmatprep.subr.msk.bf16.mxu1 %vm227_vm1, %v4632_v2  ;;  %v4633_v30 = vsel %vm4630_vm12, %v4623_v0, %v4625_v7 }
 0x197   : > { %v1043_v15 = vpop.f32.mrb[24].mxu1  ;;  %v4627_v17 = vpop.permute.xlu0 %4626  ;;  %v4646_v13 = vsel %vm227_vm1, %v4633_v30, 0  ;;  %v5632_v12 = vld [vmem:[%s6792_s0 + $0x60] sm:$0xf] }
 0x198   : > { %v1092_v18 = vadd.f32 %v1043_v15, %v898_v45  ;;  %v1045_v19 = vpop.f32.mrb[25].mxu1  ;;  %5621 = vmatmul.mubr.msk.bf16.vlgmr.msra.gmra.mrb[132].mxu0 %vm223_vm2, %v5618_v4  ;;  %v4634_v20 = vsel %vm4630_vm12, %v4625_v7, %v4627_v17 }
 0x199   : > { %v1093_v21 = vadd.f32 %v1045_v19, %v899_v48  ;;  %5848 = vmatpush3.bf16.msra.mxu0 %v4458_v9  ;;  %v1047_v5 = vpop.f32.mrb[26].mxu1  ;;  %5849 = vmatprep.mubr.msk.bf16.mxu0 %vm5942_vm3, %v5941_v25  ;;  %v4629_v23 = vpop.permute.xlu1 %4628 }
 0x19a   : > { %v1048_v27 = vpop.f32.mrb[27].mxu1  ;;  %5629 = vmatprep.subr.msk.bf16.mxu0 %vm227_vm1, %v4634_v20  ;;  %v4635_v37 = vsel %vm4630_vm12, %v4627_v17, %v4629_v23 }
 0x19b   : > { %v1084_v29 = vpop.f32.mrb[28].mxu0  ;;  %v4813_v31 = vpop.permute.xlu0 %4812  ;;  %v4652_v43 = vsel %vm227_vm1, %v4635_v37, 0 }
 0x19c   : > { %v1094_v32 = vadd.f32 %v1084_v29, %v900_v56  ;;  %v5743_v10 = vpop.f32.mrb[29].mxu0  ;;  %5623 = vmatmul.mubr.msk.bf16.vlgmr.msra.gmra.mrb[132].mxu1 %vm223_vm2, %v5618_v4 }
 0x19d   : > { %4655 = vmatpush1.bf16.msra.mxu1 %v4640_v24  ;;  %v1087_v33 = vpop.f32.mrb[30].mxu0  ;;  %4686 = vmatprep.mubr.bf16.mxu1 %v5929_v6  ;;  %v4815_v34 = vpop.permute.xlu1 %4814 }
 0x19e   : > { %v5744_v14 = vpop.f32.mrb[31].mxu0  ;;  %5853 = vmatprep.subr.bf16.mxu1 %v5941_v25  ;;  %v4825_v46 = vsel %vm4824_vm13, %v4813_v31, %v4815_v34 }
 0x19f   : > { %v1196_v36 = vpop.f32.mrb[28].mxu1  ;;  %v4817_v22 = vpop.permute.xlu0 %4816  ;;  %v4834_v54 = vsel %vm227_vm1, %v4825_v46, 0 }
 0x1a0   : > { %v1284_v26 = vadd.f32 %v1196_v36, %v1090_v8  ;;  %v1198_v38 = vpop.f32.mrb[29].mxu1  ;;  %5850 = vmatmul.mubr.msk.bf16.vlgmr.msra.gmra.mrb[136].mxu0 %vm223_vm2, %v5618_v4  ;;  %v4826_v39 = vsel %vm4824_vm13, %v4815_v34, %v4817_v22 }
 0x1a1   : > { %v1285_v40 = vadd.f32 %v1198_v38, %v1091_v11  ;;  %4696 = vmatpush1.bf16.msra.mxu0 %v4646_v13  ;;  %v1200_v41 = vpop.f32.mrb[30].mxu1  ;;  %4727 = vmatprep.mubr.bf16.mxu0 %v5929_v6  ;;  %v4819_v42 = vpop.permute.xlu1 %4818 }
 0x1a2   : > { %v1201_v44 = vpop.f32.mrb[31].mxu1  ;;  %5634 = vmatprep.subr.msk.bf16.mxu0 %vm227_vm1, %v4826_v39  ;;  %v4827_v57 = vsel %vm4824_vm13, %v4817_v22, %v4819_v42 }
 0x1a3   : > { %v1237_v45 = vpop.f32.mrb[32].mxu0  ;;  %v4821_v47 = vpop.permute.xlu0 %4820  ;;  %v4840_v63 = vsel %vm227_vm1, %v4827_v57, 0 }
 0x1a4   : > { %v1286_v48 = vadd.f32 %v1237_v45, %v1092_v18  ;;  %v1239_v49 = vpop.f32.mrb[33].mxu0  ;;  %5628 = vmatmul.mubr.msk.bf16.vlgmr.msra.gmra.mrb[136].mxu1 %vm223_vm2, %v5625_v28  ;;  %v4828_v50 = vsel %vm4824_vm13, %v4819_v42, %v4821_v47 }
 0x1a5   : > { %v1287_v51 = vadd.f32 %v1239_v49, %v1093_v21  ;;  %5854 = vmatpush3.bf16.msra.mxu1 %v4652_v43  ;;  %v1241_v52 = vpop.f32.mrb[34].mxu0  ;;  %5855 = vmatprep.mubr.msk.bf16.mxu1 %vm5942_vm3, %v5941_v25  ;;  %v4823_v53 = vpop.permute.xlu1 %4822  ;;  %v5639_v43 = vld [vmem:[%s6792_s0 + $0x64] sm:$0xf] }
 0x1a6   : > { %v1242_v55 = vpop.f32.mrb[35].mxu0  ;;  %5636 = vmatprep.subr.msk.bf16.mxu1 %vm227_vm1, %v4828_v50  ;;  %v4829_v1 = vsel %vm4824_vm13, %v4821_v47, %v4823_v53 }
 0x1a7   : > { %v1278_v56 = vpop.f32.mrb[32].mxu1  ;;  %v5007_v58 = vpop.permute.xlu0 %5006  ;;  %v4846_v16 = vsel %vm227_vm1, %v4829_v1, 0 }
 0x1a8   : > { %v1288_v59 = vadd.f32 %v1278_v56, %v1094_v32  ;;  %5630 = vmatmul.mubr.msk.bf16.vlgmr.msra.gmra.mrb[140].mxu0 %vm223_vm2, %v5625_v28  ;;  %v5749_v60 = vpop.f32.mrb[33].mxu1 }
 0x1a9   : > { %4849 = vmatpush1.bf16.msra.mxu0 %v4834_v54  ;;  %v1281_v61 = vpop.f32.mrb[34].mxu1  ;;  %4880 = vmatprep.mubr.bf16.mxu0 %v5929_v6  ;;  %v5009_v62 = vpop.permute.xlu1 %5008 }
 0x1aa   : > { %v5750_v0 = vpop.f32.mrb[35].mxu1  ;;  %5859 = vmatprep.subr.bf16.mxu0 %v5941_v25  ;;  %v5019_v19 = vsel %vm5018_vm14, %v5007_v58, %v5009_v62 }
 0x1ab   : > { %v1390_v8 = vpop.f32.mrb[36].mxu0  ;;  %v5011_v2 = vpop.permute.xlu0 %5010  ;;  %v5028_v30 = vsel %vm227_vm1, %v5019_v19, 0 }
 0x1ac   : > { %v1478_v11 = vadd.f32 %v1390_v8, %v1284_v26  ;;  %v1392_v3 = vpop.f32.mrb[37].mxu0  ;;  %5856 = vmatmul.mubr.msk.bf16.vlgmr.msra.gmra.mrb[140].mxu1 %vm223_vm2, %v5625_v28  ;;  %v5020_v4 = vsel %vm5018_vm14, %v5009_v62, %v5011_v2 }
 0x1ad   : > { %v1479_v7 = vadd.f32 %v1392_v3, %v1285_v40  ;;  %4890 = vmatpush1.bf16.msra.mxu1 %v4840_v63  ;;  %v1394_v9 = vpop.f32.mrb[38].mxu0  ;;  %4921 = vmatprep.mubr.bf16.mxu1 %v5929_v6  ;;  %v5013_v15 = vpop.permute.xlu1 %5012 }
 0x1ae   : > { %v1395_v17 = vpop.f32.mrb[39].mxu0  ;;  %5641 = vmatprep.subr.msk.bf16.mxu1 %vm227_vm1, %v5020_v4  ;;  %v5021_v10 = vsel %vm5018_vm14, %v5011_v2, %v5013_v15 }
 0x1af   : > { %v1431_v18 = vpop.f32.mrb[36].mxu1  ;;  %v5015_v20 = vpop.permute.xlu0 %5014  ;;  %v5034_v36 = vsel %vm227_vm1, %v5021_v10, 0 }
 0x1b0   : > { %v1480_v21 = vadd.f32 %v1431_v18, %v1286_v48  ;;  %v1433_v5 = vpop.f32.mrb[37].mxu1  ;;  %5635 = vmatmul.mubr.msk.bf16.vlgmr.msra.gmra.mrb[144].mxu0 %vm223_vm2, %v5632_v12  ;;  %v5022_v23 = vsel %vm5018_vm14, %v5013_v15, %v5015_v20 }
 0x1b1   : > { %v1481_v24 = vadd.f32 %v1433_v5, %v1287_v51  ;;  %5860 = vmatpush3.bf16.msra.mxu0 %v4846_v16  ;;  %v1435_v27 = vpop.f32.mrb[38].mxu1  ;;  %5861 = vmatprep.mubr.msk.bf16.mxu0 %vm5942_vm3, %v5941_v25  ;;  %v5017_v29 = vpop.permute.xlu1 %5016 }
 0x1b2   : > { %v1436_v31 = vpop.f32.mrb[39].mxu1  ;;  %5643 = vmatprep.subr.msk.bf16.mxu0 %vm227_vm1, %v5022_v23  ;;  %v5023_v26 = vsel %vm5018_vm14, %v5015_v20, %v5017_v29 }
 0x1b3   : > { %v1472_v32 = vpop.f32.mrb[40].mxu0  ;;  %v5201_v33 = vpop.permute.xlu0 %5200  ;;  %v5040_v45 = vsel %vm227_vm1, %v5023_v26, 0 }
 0x1b4   : > { %v1482_v34 = vadd.f32 %v1472_v32, %v1288_v59  ;;  %v5755_v35 = vpop.f32.mrb[41].mxu0  ;;  %5637 = vmatmul.mubr.msk.bf16.vlgmr.msra.gmra.mrb[144].mxu1 %vm223_vm2, %v5632_v12 }
 0x1b5   : > { %5043 = vmatpush1.bf16.msra.mxu1 %v5028_v30  ;;  %v1475_v13 = vpop.f32.mrb[42].mxu0  ;;  %5074 = vmatprep.mubr.bf16.mxu1 %v5929_v6  ;;  %v5203_v14 = vpop.permute.xlu1 %5202 }
 0x1b6   : > { %v5756_v37 = vpop.f32.mrb[43].mxu0  ;;  %5865 = vmatprep.subr.bf16.mxu1 %v5941_v25  ;;  %v5213_v48 = vsel %vm5212_vm15, %v5201_v33, %v5203_v14 }
 0x1b7   : > { %v1584_v22 = vpop.f32.mrb[40].mxu1  ;;  %v5205_v38 = vpop.permute.xlu0 %5204  ;;  %v5222_v55 = vsel %vm227_vm1, %v5213_v48, 0 }
 0x1b8   : > { %v1672_v39 = vadd.f32 %v1584_v22, %v1478_v11  ;;  %v1586_v40 = vpop.f32.mrb[41].mxu1  ;;  %5862 = vmatmul.mubr.msk.bf16.vlgmr.msra.gmra.mrb[148].mxu0 %vm223_vm2, %v5632_v12  ;;  %v5214_v41 = vsel %vm5212_vm15, %v5203_v14, %v5205_v38 }
 0x1b9   : > { %v1673_v28 = vadd.f32 %v1586_v40, %v1479_v7  ;;  %5084 = vmatpush1.bf16.msra.mxu0 %v5034_v36  ;;  %v1588_v42 = vpop.f32.mrb[42].mxu1  ;;  %5115 = vmatprep.mubr.bf16.mxu0 %v5929_v6  ;;  %v5207_v44 = vpop.permute.xlu1 %5206  ;;  %v5646_v7 = vld [vmem:[%s6792_s0 + $0x68] sm:$0xf] }
 0x1ba   : > { %v1589_v46 = vpop.f32.mrb[43].mxu1  ;;  %5648 = vmatprep.subr.msk.bf16.mxu0 %vm227_vm1, %v5214_v41  ;;  %v5215_v58 = vsel %vm5212_vm15, %v5205_v38, %v5207_v44 }
 0x1bb   : > { %v1625_v47 = vpop.f32.mrb[44].mxu0  ;;  %v5209_v49 = vpop.permute.xlu0 %5208  ;;  %v5228_v63 = vsel %vm227_vm1, %v5215_v58, 0 }
 0x1bc   : > { %v1674_v50 = vadd.f32 %v1625_v47, %v1480_v21  ;;  %v1627_v51 = vpop.f32.mrb[45].mxu0  ;;  %5642 = vmatmul.mubr.msk.bf16.vlgmr.msra.gmra.mrb[148].mxu1 %vm223_vm2, %v5639_v43  ;;  %v5216_v52 = vsel %vm5212_vm15, %v5207_v44, %v5209_v49 }
 0x1bd   : > { %v1675_v53 = vadd.f32 %v1627_v51, %v1481_v24  ;;  %5866 = vmatpush3.bf16.msra.mxu1 %v5040_v45  ;;  %v1629_v54 = vpop.f32.mrb[46].mxu0  ;;  %5867 = vmatprep.mubr.msk.bf16.mxu1 %vm5942_vm3, %v5941_v25  ;;  %v5211_v61 = vpop.permute.xlu1 %5210 }
 0x1be   : > { %v1630_v56 = vpop.f32.mrb[47].mxu0  ;;  %5650 = vmatprep.subr.msk.bf16.mxu1 %vm227_vm1, %v5216_v52  ;;  %v5217_v1 = vsel %vm5212_vm15, %v5209_v49, %v5211_v61 }
 0x1bf   : > { %v1666_v57 = vpop.f32.mrb[44].mxu1  ;;  %v5234_v12 = vsel %vm227_vm1, %v5217_v1, 0 }
 0x1c0   : > { %v1676_v59 = vadd.f32 %v1666_v57, %v1482_v34  ;;  %5644 = vmatmul.mubr.msk.bf16.vlgmr.msra.gmra.mrb[152].mxu0 %vm223_vm2, %v5639_v43  ;;  %v5761_v60 = vpop.f32.mrb[45].mxu1 }
 0x1c1   : > { %5237 = vmatpush1.bf16.msra.mxu0 %v5222_v55  ;;  %v1669_v62 = vpop.f32.mrb[46].mxu1  ;;  %5268 = vmatprep.mubr.bf16.mxu0 %v5929_v6 }
 0x1c2   : > { %v5762_v0 = vpop.f32.mrb[47].mxu1  ;;  %5871 = vmatprep.subr.bf16.mxu0 %v5941_v25 }
 0x1c3   : > { %v1778_v8 = vpop.f32.mrb[48].mxu0 }
 0x1c4   : > { %v1866_v2 = vadd.f32 %v1778_v8, %v1672_v39  ;;  %v1780_v11 = vpop.f32.mrb[49].mxu0  ;;  %5868 = vmatmul.mubr.msk.bf16.vlgmr.msra.gmra.mrb[152].mxu1 %vm223_vm2, %v5639_v43 }
 0x1c5   : > { %v1867_v3 = vadd.f32 %v1780_v11, %v1673_v28  ;;  %5278 = vmatpush1.bf16.msra.mxu1 %v5228_v63  ;;  %v1782_v4 = vpop.f32.mrb[50].mxu0  ;;  %5309 = vmatprep.mubr.bf16.mxu1 %v5929_v6 }
 0x1c6   : > { %v1783_v9 = vpop.f32.mrb[51].mxu0 }
 0x1c7   : > { %v1819_v15 = vpop.f32.mrb[48].mxu1 }
 0x1c8   : > { %v1868_v16 = vadd.f32 %v1819_v15, %v1674_v50  ;;  %v1821_v17 = vpop.f32.mrb[49].mxu1  ;;  %5649 = vmatmul.mubr.msk.bf16.vlgmr.msra.gmra.mrb[156].mxu0 %vm223_vm2, %v5646_v7 }
 0x1c9   : > { %v1869_v18 = vadd.f32 %v1821_v17, %v1675_v53  ;;  %5872 = vmatpush3.bf16.msra.mxu0 %v5234_v12  ;;  %v1823_v19 = vpop.f32.mrb[50].mxu1  ;;  %5873 = vmatprep.mubr.msk.bf16.mxu0 %vm5942_vm3, %v5941_v25 }
 0x1ca   : > { %v1824_v20 = vpop.f32.mrb[51].mxu1 }
 0x1cb   : > { %v1860_v21 = vpop.f32.mrb[52].mxu0 }
 0x1cc   : > { %v1870_v5 = vadd.f32 %v1860_v21, %v1676_v59  ;;  %v5767_v23 = vpop.f32.mrb[53].mxu0  ;;  %5651 = vmatmul.mubr.msk.bf16.vlgmr.msra.gmra.mrb[156].mxu1 %vm223_vm2, %v5646_v7 }
 0x1cd   : > { %v1863_v6 = vpop.f32.mrb[54].mxu0 }
 0x1ce   : > { %v5768_v24 = vpop.f32.mrb[55].mxu0 }
 0x1cf   : > { %v1972_v27 = vpop.f32.mrb[52].mxu1 }
 0x1d0   : > { %v2060_v29 = vadd.f32 %v1972_v27, %v1866_v2  ;;  %v1974_v30 = vpop.f32.mrb[53].mxu1  ;;  %5874 = vmatmul.mubr.msk.bf16.vlgmr.msra.gmra.mrb[160].mxu0 %vm223_vm2, %v5646_v7 }
 0x1d1   : > { %v2061_v31 = vadd.f32 %v1974_v30, %v1867_v3  ;;  %v1976_v32 = vpop.f32.mrb[54].mxu1 }
 0x1d2   : > { %v1977_v10 = vpop.f32.mrb[55].mxu1 }
 0x1d3   : > { %v2013_v33 = vpop.f32.mrb[56].mxu0 }
 0x1d4   : > { %v2062_v34 = vadd.f32 %v2013_v33, %v1868_v16  ;;  %v2015_v35 = vpop.f32.mrb[57].mxu0 }
 0x1d5   : > { %v2063_v25 = vadd.f32 %v2015_v35, %v1869_v18  ;;  %v2017_v13 = vpop.f32.mrb[58].mxu0 }
 0x1d6   : > { %v2018_v14 = vpop.f32.mrb[59].mxu0 }
 0x1d7   : > { %v2054_v36 = vpop.f32.mrb[56].mxu1 }
 0x1d8   : > { %v2064_v37 = vadd.f32 %v2054_v36, %v1870_v5  ;;  %v5773_v22 = vpop.f32.mrb[57].mxu1 }
 0x1d9   : > { %v2057_v26 = vpop.f32.mrb[58].mxu1 }
 0x1da   : > { %v5774_v38 = vpop.f32.mrb[59].mxu1 }
 0x1db   : > { %v2166_v39 = vpop.f32.mrb[60].mxu0 }
 0x1dc   : > { %v2254_v40 = vadd.f32 %v2166_v39, %v2060_v29  ;;  %v2168_v41 = vpop.f32.mrb[61].mxu0 }
 0x1dd   : > { %v2255_v28 = vadd.f32 %v2168_v41, %v2061_v31  ;;  %v2170_v42 = vpop.f32.mrb[62].mxu0 }
 0x1de   : > { %v2171_v43 = vpop.f32.mrb[63].mxu0 }
 0x1df   : > { %v2207_v44 = vpop.f32.mrb[60].mxu1 }
 0x1e0   : > { %v2256_v45 = vadd.f32 %v2207_v44, %v2062_v34  ;;  %v2209_v46 = vpop.f32.mrb[61].mxu1 }
 0x1e1   : > { %v2257_v47 = vadd.f32 %v2209_v46, %v2063_v25  ;;  %v2211_v48 = vpop.f32.mrb[62].mxu1 }
 0x1e2   : > { %v2212_v49 = vpop.f32.mrb[63].mxu1 }
 0x1e3   : > { %v2248_v50 = vpop.f32.mrb[64].mxu0 }
 0x1e4   : > { %v2258_v51 = vadd.f32 %v2248_v50, %v2064_v37  ;;  %v5779_v52 = vpop.f32.mrb[65].mxu0 }
 0x1e5   : > { %v2251_v53 = vpop.f32.mrb[66].mxu0 }
 0x1e6   : > { %v5780_v54 = vpop.f32.mrb[67].mxu0 }
 0x1e7   : > { %v2360_v55 = vpop.f32.mrb[64].mxu1 }
 0x1e8   : > { %v2448_v56 = vadd.f32 %v2360_v55, %v2254_v40  ;;  %v2362_v57 = vpop.f32.mrb[65].mxu1 }
 0x1e9   : > { %v2449_v58 = vadd.f32 %v2362_v57, %v2255_v28  ;;  %v2364_v59 = vpop.f32.mrb[66].mxu1 }
 0x1ea   : > { %v2365_v60 = vpop.f32.mrb[67].mxu1 }
 0x1eb   : > { %v2401_v61 = vpop.f32.mrb[68].mxu0 }
 0x1ec   : > { %v2450_v62 = vadd.f32 %v2401_v61, %v2256_v45  ;;  %v2403_v63 = vpop.f32.mrb[69].mxu0 }
 0x1ed   : > { %v2451_v0 = vadd.f32 %v2403_v63, %v2257_v47  ;;  %v2405_v8 = vpop.f32.mrb[70].mxu0 }
 0x1ee   : > { %v2406_v1 = vpop.f32.mrb[71].mxu0 }
 0x1ef   : > { %v2442_v2 = vpop.f32.mrb[68].mxu1 }
 0x1f0   : > { %v2452_v11 = vadd.f32 %v2442_v2, %v2258_v51  ;;  %v5785_v3 = vpop.f32.mrb[69].mxu1 }
 0x1f1   : > { %v2445_v4 = vpop.f32.mrb[70].mxu1 }
 0x1f2   : > { %v5786_v7 = vpop.f32.mrb[71].mxu1 }
 0x1f3   : > { %v2554_v9 = vpop.f32.mrb[72].mxu0 }
 0x1f4   : > { %v2642_v12 = vadd.f32 %v2554_v9, %v2448_v56  ;;  %v2556_v15 = vpop.f32.mrb[73].mxu0 }
 0x1f5   : > { %v2643_v16 = vadd.f32 %v2556_v15, %v2449_v58  ;;  %v2558_v17 = vpop.f32.mrb[74].mxu0 }
 0x1f6   : > { %v2559_v18 = vpop.f32.mrb[75].mxu0 }
 0x1f7   : > { %v2595_v19 = vpop.f32.mrb[72].mxu1 }
 0x1f8   : > { %v2644_v20 = vadd.f32 %v2595_v19, %v2450_v62  ;;  %v2597_v21 = vpop.f32.mrb[73].mxu1 }
 0x1f9   : > { %v2645_v5 = vadd.f32 %v2597_v21, %v2451_v0  ;;  %v2599_v23 = vpop.f32.mrb[74].mxu1 }
 0x1fa   : > { %v2600_v6 = vpop.f32.mrb[75].mxu1 }
 0x1fb   : > { %v2636_v24 = vpop.f32.mrb[76].mxu0 }
 0x1fc   : > { %v2646_v27 = vadd.f32 %v2636_v24, %v2452_v11  ;;  %v5791_v29 = vpop.f32.mrb[77].mxu0 }
 0x1fd   : > { %v2639_v30 = vpop.f32.mrb[78].mxu0 }
 0x1fe   : > { %v5792_v31 = vpop.f32.mrb[79].mxu0 }
 0x1ff   : > { %v2748_v32 = vpop.f32.mrb[76].mxu1 }
 0x200   : > { %v2836_v10 = vadd.f32 %v2748_v32, %v2642_v12  ;;  %v2750_v33 = vpop.f32.mrb[77].mxu1 }
 0x201   : > { %v2837_v34 = vadd.f32 %v2750_v33, %v2643_v16  ;;  %v2752_v35 = vpop.f32.mrb[78].mxu1 }
 0x202   : > { %v2753_v25 = vpop.f32.mrb[79].mxu1 }
 0x203   : > { %v2789_v13 = vpop.f32.mrb[80].mxu0 }
 0x204   : > { %v2838_v14 = vadd.f32 %v2789_v13, %v2644_v20  ;;  %v2791_v36 = vpop.f32.mrb[81].mxu0 }
 0x205   : > { %v2839_v37 = vadd.f32 %v2791_v36, %v2645_v5  ;;  %v2793_v22 = vpop.f32.mrb[82].mxu0 }
 0x206   : > { %v2794_v26 = vpop.f32.mrb[83].mxu0 }
 0x207   : > { %v2830_v38 = vpop.f32.mrb[80].mxu1 }
 0x208   : > { %v2840_v39 = vadd.f32 %v2830_v38, %v2646_v27  ;;  %v5797_v40 = vpop.f32.mrb[81].mxu1 }
 0x209   : > { %v2833_v41 = vpop.f32.mrb[82].mxu1 }
 0x20a   : > { %v5798_v28 = vpop.f32.mrb[83].mxu1 }
 0x20b   : > { %v2942_v42 = vpop.f32.mrb[84].mxu0 }
 0x20c   : > { %v3030_v43 = vadd.f32 %v2942_v42, %v2836_v10  ;;  %v2944_v44 = vpop.f32.mrb[85].mxu0 }
 0x20d   : > { %v3031_v45 = vadd.f32 %v2944_v44, %v2837_v34  ;;  %v2946_v46 = vpop.f32.mrb[86].mxu0 }
 0x20e   : > { %v2947_v47 = vpop.f32.mrb[87].mxu0 }
 0x20f   : > { %v2983_v48 = vpop.f32.mrb[84].mxu1 }
 0x210   : > { %v3032_v49 = vadd.f32 %v2983_v48, %v2838_v14  ;;  %v2985_v50 = vpop.f32.mrb[85].mxu1 }
 0x211   : > { %v3033_v51 = vadd.f32 %v2985_v50, %v2839_v37  ;;  %v2987_v52 = vpop.f32.mrb[86].mxu1 }
 0x212   : > { %v2988_v53 = vpop.f32.mrb[87].mxu1 }
 0x213   : > { %v3024_v54 = vpop.f32.mrb[88].mxu0 }
 0x214   : > { %v3034_v55 = vadd.f32 %v3024_v54, %v2840_v39  ;;  %v5803_v56 = vpop.f32.mrb[89].mxu0 }
 0x215   : > { %v3027_v57 = vpop.f32.mrb[90].mxu0 }
 0x216   : > { %v5804_v58 = vpop.f32.mrb[91].mxu0 }
 0x217   : > { %v3136_v59 = vpop.f32.mrb[88].mxu1 }
 0x218   : > { %v3224_v60 = vadd.f32 %v3136_v59, %v3030_v43  ;;  %v3138_v61 = vpop.f32.mrb[89].mxu1 }
 0x219   : > { %v3225_v62 = vadd.f32 %v3138_v61, %v3031_v45  ;;  %v3140_v63 = vpop.f32.mrb[90].mxu1 }
 0x21a   : > { %v3141_v0 = vpop.f32.mrb[91].mxu1 }
 0x21b   : > { %v3177_v8 = vpop.f32.mrb[92].mxu0 }
 0x21c   : > { %v3226_v1 = vadd.f32 %v3177_v8, %v3032_v49  ;;  %v3179_v2 = vpop.f32.mrb[93].mxu0 }
 0x21d   : > { %v3227_v11 = vadd.f32 %v3179_v2, %v3033_v51  ;;  %v3181_v3 = vpop.f32.mrb[94].mxu0 }
 0x21e   : > { %v3182_v4 = vpop.f32.mrb[95].mxu0 }
 0x21f   : > { %v3218_v7 = vpop.f32.mrb[92].mxu1 }
 0x220   : > { %v3228_v9 = vadd.f32 %v3218_v7, %v3034_v55  ;;  %v5809_v12 = vpop.f32.mrb[93].mxu1 }
 0x221   : > { %v3221_v15 = vpop.f32.mrb[94].mxu1 }
 0x222   : > { %v5810_v16 = vpop.f32.mrb[95].mxu1 }
 0x223   : > { %v3330_v17 = vpop.f32.mrb[96].mxu0 }
 0x224   : > { %v3418_v18 = vadd.f32 %v3330_v17, %v3224_v60  ;;  %v3332_v19 = vpop.f32.mrb[97].mxu0 }
 0x225   : > { %v3419_v20 = vadd.f32 %v3332_v19, %v3225_v62  ;;  %v3334_v21 = vpop.f32.mrb[98].mxu0 }
 0x226   : > { %v3335_v5 = vpop.f32.mrb[99].mxu0 }
 0x227   : > { %v3371_v23 = vpop.f32.mrb[96].mxu1 }
 0x228   : > { %v3420_v6 = vadd.f32 %v3371_v23, %v3226_v1  ;;  %v3373_v24 = vpop.f32.mrb[97].mxu1 }
 0x229   : > { %v3421_v27 = vadd.f32 %v3373_v24, %v3227_v11  ;;  %v3375_v29 = vpop.f32.mrb[98].mxu1 }
 0x22a   : > { %v3376_v30 = vpop.f32.mrb[99].mxu1 }
 0x22b   : > { %v3412_v31 = vpop.f32.mrb[100].mxu0 }
 0x22c   : > { %v3422_v32 = vadd.f32 %v3412_v31, %v3228_v9  ;;  %v5815_v10 = vpop.f32.mrb[101].mxu0 }
 0x22d   : > { %v3415_v33 = vpop.f32.mrb[102].mxu0 }
 0x22e   : > { %v5816_v34 = vpop.f32.mrb[103].mxu0 }
 0x22f   : > { %v3524_v35 = vpop.f32.mrb[100].mxu1 }
 0x230   : > { %v3612_v25 = vadd.f32 %v3524_v35, %v3418_v18  ;;  %v3526_v13 = vpop.f32.mrb[101].mxu1 }
 0x231   : > { %v3613_v14 = vadd.f32 %v3526_v13, %v3419_v20  ;;  %v3528_v36 = vpop.f32.mrb[102].mxu1 }
 0x232   : > { %v3529_v37 = vpop.f32.mrb[103].mxu1 }
 0x233   : > { %v3565_v22 = vpop.f32.mrb[104].mxu0 }
 0x234   : > { %v3614_v26 = vadd.f32 %v3565_v22, %v3420_v6  ;;  %v3567_v38 = vpop.f32.mrb[105].mxu0 }
 0x235   : > { %v3615_v39 = vadd.f32 %v3567_v38, %v3421_v27  ;;  %v3569_v40 = vpop.f32.mrb[106].mxu0 }
 0x236   : > { %v3570_v41 = vpop.f32.mrb[107].mxu0 }
 0x237   : > { %v3606_v28 = vpop.f32.mrb[104].mxu1 }
 0x238   : > { %v3616_v42 = vadd.f32 %v3606_v28, %v3422_v32  ;;  %v5821_v43 = vpop.f32.mrb[105].mxu1 }
 0x239   : > { %v3609_v44 = vpop.f32.mrb[106].mxu1 }
 0x23a   : > { %v5822_v45 = vpop.f32.mrb[107].mxu1 }
 0x23b   : > { %v3718_v46 = vpop.f32.mrb[108].mxu0 }
 0x23c   : > { %v3806_v47 = vadd.f32 %v3718_v46, %v3612_v25  ;;  %v3720_v48 = vpop.f32.mrb[109].mxu0 }
 0x23d   : > { %v3807_v49 = vadd.f32 %v3720_v48, %v3613_v14  ;;  %v3722_v50 = vpop.f32.mrb[110].mxu0 }
 0x23e   : > { %v3723_v51 = vpop.f32.mrb[111].mxu0 }
 0x23f   : > { %v3759_v52 = vpop.f32.mrb[108].mxu1 }
 0x240   : > { %v3808_v53 = vadd.f32 %v3759_v52, %v3614_v26  ;;  %v3761_v54 = vpop.f32.mrb[109].mxu1 }
 0x241   : > { %v3809_v55 = vadd.f32 %v3761_v54, %v3615_v39  ;;  %v3763_v56 = vpop.f32.mrb[110].mxu1 }
 0x242   : > { %v3764_v57 = vpop.f32.mrb[111].mxu1 }
 0x243   : > { %v3800_v58 = vpop.f32.mrb[112].mxu0 }
 0x244   : > { %v3810_v59 = vadd.f32 %v3800_v58, %v3616_v42  ;;  %v5827_v60 = vpop.f32.mrb[113].mxu0 }
 0x245   : > { %v3803_v61 = vpop.f32.mrb[114].mxu0 }
 0x246   : > { %v5828_v62 = vpop.f32.mrb[115].mxu0 }
 0x247   : > { %v3912_v63 = vpop.f32.mrb[112].mxu1 }
 0x248   : > { %v4000_v0 = vadd.f32 %v3912_v63, %v3806_v47  ;;  %v3914_v8 = vpop.f32.mrb[113].mxu1 }
 0x249   : > { %v4001_v1 = vadd.f32 %v3914_v8, %v3807_v49  ;;  %v3916_v2 = vpop.f32.mrb[114].mxu1 }
 0x24a   : > { %v3917_v11 = vpop.f32.mrb[115].mxu1 }
 0x24b   : > { %v3953_v3 = vpop.f32.mrb[116].mxu0 }
 0x24c   : > { %v4002_v4 = vadd.f32 %v3953_v3, %v3808_v53  ;;  %v3955_v7 = vpop.f32.mrb[117].mxu0 }
 0x24d   : > { %v4003_v9 = vadd.f32 %v3955_v7, %v3809_v55  ;;  %v3957_v12 = vpop.f32.mrb[118].mxu0 }
 0x24e   : > { %v3958_v15 = vpop.f32.mrb[119].mxu0 }
 0x24f   : > { %v3994_v16 = vpop.f32.mrb[116].mxu1 }
 0x250   : > { %v4004_v17 = vadd.f32 %v3994_v16, %v3810_v59  ;;  %v5833_v18 = vpop.f32.mrb[117].mxu1 }
 0x251   : > { %v3997_v19 = vpop.f32.mrb[118].mxu1 }
 0x252   : > { %v5834_v20 = vpop.f32.mrb[119].mxu1 }
 0x253   : > { %v4106_v21 = vpop.f32.mrb[120].mxu0 }
 0x254   : > { %v4194_v5 = vadd.f32 %v4106_v21, %v4000_v0  ;;  %v4108_v23 = vpop.f32.mrb[121].mxu0 }
 0x255   : > { %v4195_v6 = vadd.f32 %v4108_v23, %v4001_v1  ;;  %v4110_v24 = vpop.f32.mrb[122].mxu0 }
 0x256   : > { %v4111_v27 = vpop.f32.mrb[123].mxu0 }
 0x257   : > { %v4147_v29 = vpop.f32.mrb[120].mxu1 }
 0x258   : > { %v4196_v30 = vadd.f32 %v4147_v29, %v4002_v4  ;;  %v4149_v31 = vpop.f32.mrb[121].mxu1 }
 0x259   : > { %v4197_v32 = vadd.f32 %v4149_v31, %v4003_v9  ;;  %v4151_v10 = vpop.f32.mrb[122].mxu1 }
 0x25a   : > { %v4152_v33 = vpop.f32.mrb[123].mxu1 }
 0x25b   : > { %v4188_v34 = vpop.f32.mrb[124].mxu0 }
 0x25c   : > { %v4198_v35 = vadd.f32 %v4188_v34, %v4004_v17  ;;  %v5839_v25 = vpop.f32.mrb[125].mxu0 }
 0x25d   : > { %v4191_v13 = vpop.f32.mrb[126].mxu0 }
 0x25e   : > { %v5840_v14 = vpop.f32.mrb[127].mxu0 }
 0x25f   : > { %v4300_v36 = vpop.f32.mrb[124].mxu1 }
 0x260   : > { %v4388_v37 = vadd.f32 %v4300_v36, %v4194_v5  ;;  %v4302_v22 = vpop.f32.mrb[125].mxu1 }
 0x261   : > { %v4389_v26 = vadd.f32 %v4302_v22, %v4195_v6  ;;  %v4304_v38 = vpop.f32.mrb[126].mxu1 }
 0x262   : > { %v4305_v39 = vpop.f32.mrb[127].mxu1 }
 0x263   : > { %v4341_v40 = vpop.f32.mrb[128].mxu0 }
 0x264   : > { %v4390_v41 = vadd.f32 %v4341_v40, %v4196_v30  ;;  %v4343_v28 = vpop.f32.mrb[129].mxu0 }
 0x265   : > { %v4391_v42 = vadd.f32 %v4343_v28, %v4197_v32  ;;  %v4345_v43 = vpop.f32.mrb[130].mxu0 }
 0x266   : > { %v4346_v44 = vpop.f32.mrb[131].mxu0 }
 0x267   : > { %v4382_v45 = vpop.f32.mrb[128].mxu1 }
 0x268   : > { %v4392_v46 = vadd.f32 %v4382_v45, %v4198_v35  ;;  %v5845_v47 = vpop.f32.mrb[129].mxu1 }
 0x269   : > { %v4385_v48 = vpop.f32.mrb[130].mxu1 }
 0x26a   : > { %v5846_v49 = vpop.f32.mrb[131].mxu1 }
 0x26b   : > { %v4494_v50 = vpop.f32.mrb[132].mxu0 }
 0x26c   : > { %v4582_v51 = vadd.f32 %v4494_v50, %v4388_v37  ;;  %v4496_v52 = vpop.f32.mrb[133].mxu0 }
 0x26d   : > { %v4583_v53 = vadd.f32 %v4496_v52, %v4389_v26  ;;  %v4498_v54 = vpop.f32.mrb[134].mxu0 }
 0x26e   : > { %v4499_v55 = vpop.f32.mrb[135].mxu0 }
 0x26f   : > { %v4535_v56 = vpop.f32.mrb[132].mxu1  ;;  %v5367_v55 = vpop.permute.xlu0 %5366 }
 0x270   : > { %v4584_v57 = vadd.f32 %v4535_v56, %v4390_v41  ;;  %v4537_v58 = vpop.f32.mrb[133].mxu1 }
 0x271   : > { %v4585_v59 = vadd.f32 %v4537_v58, %v4391_v42  ;;  %v4539_v60 = vpop.f32.mrb[134].mxu1 }
 0x272   : > { %v4540_v61 = vpop.f32.mrb[135].mxu1 }
 0x273   : > { %v4576_v62 = vpop.f32.mrb[136].mxu0 }
 0x274   : > { %v4586_v63 = vadd.f32 %v4576_v62, %v4392_v46  ;;  %v5851_v0 = vpop.f32.mrb[137].mxu0 }
 0x275   : > { %v4579_v8 = vpop.f32.mrb[138].mxu0 }
 0x276   : > { %v5852_v1 = vpop.f32.mrb[139].mxu0 }
 0x277   : > { %v4688_v2 = vpop.f32.mrb[136].mxu1 }
 0x278   : > { %v4776_v11 = vadd.f32 %v4688_v2, %v4582_v51  ;;  %v4690_v3 = vpop.f32.mrb[137].mxu1 }
 0x279   : > { %v4777_v4 = vadd.f32 %v4690_v3, %v4583_v53  ;;  %v4692_v7 = vpop.f32.mrb[138].mxu1 }
 0x27a   : > { %v4693_v9 = vpop.f32.mrb[139].mxu1 }
 0x27b   : > { %v4729_v12 = vpop.f32.mrb[140].mxu0 }
 0x27c   : > { %v4778_v15 = vadd.f32 %v4729_v12, %v4584_v57  ;;  %v4731_v16 = vpop.f32.mrb[141].mxu0 }
 0x27d   : > { %v4779_v17 = vadd.f32 %v4731_v16, %v4585_v59  ;;  %v4733_v18 = vpop.f32.mrb[142].mxu0 }
 0x27e   : > { %v4734_v19 = vpop.f32.mrb[143].mxu0 }
 0x27f   : > { %v4770_v20 = vpop.f32.mrb[140].mxu1 }
 0x280   : > { %v4780_v21 = vadd.f32 %v4770_v20, %v4586_v63  ;;  %v5857_v5 = vpop.f32.mrb[141].mxu1 }
 0x281   : > { %v4773_v23 = vpop.f32.mrb[142].mxu1 }
 0x282   : > { %v5858_v6 = vpop.f32.mrb[143].mxu1 }
 0x283   : > { %v4882_v24 = vpop.f32.mrb[144].mxu0 }
 0x284   : > { %v4970_v27 = vadd.f32 %v4882_v24, %v4776_v11  ;;  %v4884_v29 = vpop.f32.mrb[145].mxu0 }
 0x285   : > { %v4971_v30 = vadd.f32 %v4884_v29, %v4777_v4  ;;  %v4886_v31 = vpop.f32.mrb[146].mxu0 }
 0x286   : > { %v4887_v32 = vpop.f32.mrb[147].mxu0 }
 0x287   : > { %v4923_v10 = vpop.f32.mrb[144].mxu1 }
 0x288   : > { %v4972_v33 = vadd.f32 %v4923_v10, %v4778_v15  ;;  %v4925_v34 = vpop.f32.mrb[145].mxu1 }
 0x289   : > { %v4973_v35 = vadd.f32 %v4925_v34, %v4779_v17  ;;  %v4927_v25 = vpop.f32.mrb[146].mxu1 }
 0x28a   : > { %v4928_v13 = vpop.f32.mrb[147].mxu1 }
 0x28b   : > { %v4964_v14 = vpop.f32.mrb[148].mxu0 }
 0x28c   : > { %v4974_v36 = vadd.f32 %v4964_v14, %v4780_v21  ;;  %v5863_v37 = vpop.f32.mrb[149].mxu0 }
 0x28d   : > { %v4967_v22 = vpop.f32.mrb[150].mxu0 }
 0x28e   : > { %v5864_v26 = vpop.f32.mrb[151].mxu0 }
 0x28f   : > { %v5076_v38 = vpop.f32.mrb[148].mxu1 }
 0x290   : > { %v5164_v39 = vadd.f32 %v5076_v38, %v4970_v27  ;;  %v5078_v40 = vpop.f32.mrb[149].mxu1 }
 0x291   : > { %v5165_v41 = vadd.f32 %v5078_v40, %v4971_v30  ;;  %v5080_v28 = vpop.f32.mrb[150].mxu1 }
 0x292   : > { %v5081_v42 = vpop.f32.mrb[151].mxu1 }
 0x293   : > { %v5117_v43 = vpop.f32.mrb[152].mxu0 }
 0x294   : > { %v5166_v44 = vadd.f32 %v5117_v43, %v4972_v33  ;;  %v5119_v45 = vpop.f32.mrb[153].mxu0 }
 0x295   : > { %v5167_v46 = vadd.f32 %v5119_v45, %v4973_v35  ;;  %v5121_v47 = vpop.f32.mrb[154].mxu0 }
 0x296   : > { %v5122_v48 = vpop.f32.mrb[155].mxu0 }
 0x297   : > { %v5158_v49 = vpop.f32.mrb[152].mxu1 }
 0x298   : > { %v5168_v50 = vadd.f32 %v5158_v49, %v4974_v36  ;;  %v5869_v51 = vpop.f32.mrb[153].mxu1 }
 0x299   : > { %v5161_v52 = vpop.f32.mrb[154].mxu1 }
 0x29a   : > { %v5870_v53 = vpop.f32.mrb[155].mxu1 }
 0x29b   : > { %v5270_v54 = vpop.f32.mrb[156].mxu0 }
 0x29c   : > { %v5358_v56 = vadd.f32 %v5270_v54, %v5164_v39  ;;  %v5272_v57 = vpop.f32.mrb[157].mxu0 }
 0x29d   : > { %v5359_v58 = vadd.f32 %v5272_v57, %v5165_v41  ;;  %v5274_v59 = vpop.f32.mrb[158].mxu0 }
 0x29e   : > { %v5369_v60 = vadd.f32 %v5367_v55, %v5358_v56  ;;  %v5275_v61 = vpop.f32.mrb[159].mxu0 }
 0x29f   : > { %v5370_v62 = vadd.f32 %v5367_v55, %v5359_v58  ;;  %v5311_v63 = vpop.f32.mrb[156].mxu1 }
 0x2a0   : > { %v5374_v0 = vmax.f32 %v5369_v60, 0.0  ;;  %v5360_v8 = vadd.f32 %v5311_v63, %v5166_v44  ;;  %v5313_v1 = vpop.f32.mrb[157].mxu1 }
 0x2a1   : > { %v5375_v2 = vmax.f32 %v5370_v62, 0.0  ;;  %v5361_v11 = vadd.f32 %v5313_v1, %v5167_v46  ;;  %v5315_v3 = vpop.f32.mrb[158].mxu1 }
 0x2a2   : > { %v5371_v4 = vadd.f32 %v5367_v55, %v5360_v8  ;;  %v5316_v7 = vpop.f32.mrb[159].mxu1 }
 0x2a3   : > { %v5658_v9 = vpack.c.bf16 %v5375_v2, %v5374_v0  ;;  %v5372_v12 = vadd.f32 %v5367_v55, %v5361_v11  ;;  %v5352_v15 = vpop.f32.mrb[160].mxu0 }
 0x2a4   : > { %v5376_v16 = vmax.f32 %v5371_v4, 0.0  ;;  %v5362_v17 = vadd.f32 %v5352_v15, %v5168_v50  ;;  %v5875_v18 = vpop.f32.mrb[161].mxu0 }
 0x2a5   : > { %v5377_v19 = vmax.f32 %v5372_v12, 0.0  ;;  %5400 = vst [vmem:[%s170_s28] sm:$0xff] %v5658_v9  ;;  %v5355_v20 = vpop.f32.mrb[162].mxu0 }
 0x2a6   : > { %v5373_v21 = vadd.f32 %v5367_v55, %v5362_v17  ;;  %v5876_v5 = vpop.f32.mrb[163].mxu0 }
 0x2a7   : > { %v5659_v23 = vpack.c.bf16 %v5377_v19, %v5376_v16 }
 0x2a8   : > { %v5378_v6 = vmax.f32 %v5373_v21, 0.0 }
 0x2a9   : > { %5401 = vst [vmem:[%s170_s28 + $0x8] sm:$0xff] %v5659_v23 }
 0x2aa   : > { %v5660_v24 = vpack.c.bf16 %v5378_v6, %v5378_v6 }
 0x2ac   : > { %5402 = vst [vmem:[%s170_s28 + $0x10] sm:$0xf] %v5660_v24 }
 0x2ad PF: > { %s13_s12 = sadd.s32 1, %s5926_s12  }
 0x2ae   : > { %p10_p4 = scmp.ge.s32.totalorder %s13_s12, 4  }
 0x2b0   :  { %12 = sbr.rel (!%p10_p4) target bundleno = 1 (0x1), region = 88 }

</bundles_post_ra>
